<compile_context>
chip_gen: v7x
topology: tpu7x:2x2x1
jax: 0.10.0
libtpu: 0.0.40
codegen_flags: <defaults>
</compile_context>

<pallas_src>
import jax
import jax.numpy as jnp
from jax.experimental import pallas as pl
from jax.experimental.pallas import tpu as pltpu


# ----------------------------- Pallas kernel -------------------------------

def fused_conv_pool_head_kernel(x_ref, wc_ref, bc_ref, wh_ref, bh_ref, o_ref):
    """One batch item per grid step.

    x_ref : (H+2, W+2, Cin)  bf16  zero-padded NHWC image
    wc_ref: (9*Cin, Cout)    bf16  conv weight as im2col column matrix
    bc_ref: (1, Cout)        f32   conv bias
    wh_ref: (Cout, NC)       f32   head (linear) weight
    bh_ref: (1, NC)          f32   head bias
    o_ref : (1, NC)          f32   logits row for this batch item
    """
    Hp, Wp, Cin = x_ref.shape
    H, W = Hp - 2, Wp - 2

    # In-kernel im2col: nine statically-shifted HxW views of the padded tile,
    # concatenated along channels -> (H, W, 9*Cin) -> (H*W, 9*Cin).
    cols = [x_ref[kh:kh + H, kw:kw + W, :]
            for kh in range(3) for kw in range(3)]
    patches = jnp.concatenate(cols, axis=-1).reshape(H * W, 9 * Cin)

    # Conv as one MXU matmul (bf16 x bf16 -> f32 accumulate) + bias + ReLU.
    feat = jnp.dot(patches, wc_ref[...], preferred_element_type=jnp.float32)
    feat = jnp.maximum(feat + bc_ref[...], 0.0)            # (H*W, Cout) f32

    # Global average pool: sublane-dim sum (XLU) * compile-time 1/(H*W).
    pooled = jnp.sum(feat, axis=0, keepdims=True) * (1.0 / (H * W))  # (1, Cout)

    # Classifier head.
    logits = jnp.dot(pooled, wh_ref[...], preferred_element_type=jnp.float32)
    o_ref[...] = (logits + bh_ref[...]).astype(o_ref.dtype)


# ------------------------------ JAX glue ------------------------------------

@jax.jit
def composable_model_forward(x_nchw, conv_w, conv_b, head_w, head_b):
    """Equivalent of ComposableModel.forward for the chosen backbone/head."""
    B, C_in, H, W = x_nchw.shape
    C_out = conv_w.shape[0]
    NC = head_w.shape[1]
    Hp, Wp = H + 2, W + 2

    # NCHW -> NHWC, zero-pad for 3x3 SAME conv, cast to bf16 (MXU fast path,
    # halves HBM->VMEM DMA traffic of the only large input).
    x_nhwc = jnp.transpose(x_nchw, (0, 2, 3, 1))
    x_pad = jnp.pad(x_nhwc, ((0, 0), (1, 1), (1, 1), (0, 0))).astype(jnp.bfloat16)

    # torch conv weight (Cout, Cin, kh, kw) -> im2col column matrix
    # (kh*kw*Cin, Cout), matching the in-kernel patch ordering (kh, kw, cin).
    w_col = jnp.transpose(conv_w, (2, 3, 1, 0)).reshape(9 * C_in, C_out)
    w_col = w_col.astype(jnp.bfloat16)
    bc = conv_b.reshape(1, C_out).astype(jnp.float32)
    wh = head_w.astype(jnp.float32)
    bh = head_b.reshape(1, NC).astype(jnp.float32)

    out = pl.pallas_call(
        fused_conv_pool_head_kernel,
        out_shape=jax.ShapeDtypeStruct((B, 1, NC), jnp.float32),
        grid=(B,),
        in_specs=[
            # padded image, one batch item per grid step (batch dim squeezed)
            pl.BlockSpec((None, Hp, Wp, C_in), lambda b: (b, 0, 0, 0)),
            # small weights/biases are fully resident every step
            pl.BlockSpec((9 * C_in, C_out), lambda b: (0, 0)),
            pl.BlockSpec((1, C_out), lambda b: (0, 0)),
            pl.BlockSpec((C_out, NC), lambda b: (0, 0)),
            pl.BlockSpec((1, NC), lambda b: (0, 0)),
        ],
        out_specs=pl.BlockSpec((None, 1, NC), lambda b: (b, 0, 0)),
        compiler_params=pltpu.CompilerParams(
            dimension_semantics=("parallel",)),   # shard batch across TCs (v7x)
    )(x_pad, w_col, bc, wh, bh)

    return out.reshape(B, NC)


# ------------------------------- main ---------------------------------------

if __name__ == "__main__":
    B, C_in, H, W = 2, 4, 16, 16
    C_out, num_classes = 16, 10

    key = jax.random.PRNGKey(0)
    k_x, k_cw, k_cb, k_hw, k_hb = jax.random.split(key, 5)

    x = jax.random.normal(k_x, (B, C_in, H, W), dtype=jnp.float32)
    # deterministic synthetic parameters (shapes match the PyTorch layers)
    conv_w = jax.random.normal(k_cw, (C_out, C_in, 3, 3), jnp.float32) * 0.1
    conv_b = jax.random.normal(k_cb, (C_out,), jnp.float32) * 0.1
    head_w = jax.random.normal(k_hw, (C_out, num_classes), jnp.float32) * 0.1
    head_b = jax.random.normal(k_hb, (num_classes,), jnp.float32) * 0.1

    out = composable_model_forward(x, conv_w, conv_b, head_w, head_b)
    out = jax.block_until_ready(out)

    # sanity check against a pure-JAX f32 reference (bf16 conv inputs in the
    # kernel -> loosened tolerance)
    def ref_forward(x_nchw):
        xh = jnp.transpose(x_nchw, (0, 2, 3, 1))
        y = jax.lax.conv_general_dilated(
            xh, jnp.transpose(conv_w, (2, 3, 1, 0)),
            window_strides=(1, 1), padding="SAME",
            dimension_numbers=("NHWC", "HWIO", "NHWC"))
        y = jnp.maximum(y + conv_b, 0.0)
        pooled = jnp.mean(y, axis=(1, 2))
        return pooled @ head_w + head_b

    ref = ref_forward(x)
    assert out.shape == (B, num_classes)
    assert jnp.allclose(out, ref, atol=2e-2, rtol=2e-2), (
        f"max abs err {jnp.max(jnp.abs(out - ref))}")
    print("KERNEL_OK")
</pallas_src>

<mosaic_0001>
module attributes {stable_mosaic.version = 11 : i64} {
  func.func @fused_conv_pool_head_kernel(%arg0: i32, %arg1: memref<1x18x18x4xbf16, #tpu.memory_space<vmem>>, %arg2: memref<36x16xbf16, #tpu.memory_space<vmem>>, %arg3: memref<1x16xf32, #tpu.memory_space<vmem>>, %arg4: memref<16x10xf32, #tpu.memory_space<vmem>>, %arg5: memref<1x10xf32, #tpu.memory_space<vmem>>, %arg6: memref<1x1x10xf32, #tpu.memory_space<vmem>>) attributes {dimension_semantics = [#tpu.dimension_semantics<parallel>], iteration_bounds = array<i64: 2>, scalar_prefetch = 0 : i64, scratch_operands = 0 : i64, tpu.core_type = #tpu.core_type<tc>, window_params = [{transform_indices = @transform_0, window_bounds = array<i64: 1, 18, 18, 4>}, {pipeline_mode = #tpu.pipeline_mode<synchronous>, transform_indices = @transform_1, window_bounds = array<i64: 36, 16>}, {pipeline_mode = #tpu.pipeline_mode<synchronous>, transform_indices = @transform_2, window_bounds = array<i64: 1, 16>}, {pipeline_mode = #tpu.pipeline_mode<synchronous>, transform_indices = @transform_3, window_bounds = array<i64: 16, 10>}, {pipeline_mode = #tpu.pipeline_mode<synchronous>, transform_indices = @transform_4, window_bounds = array<i64: 1, 10>}, {transform_indices = @transform_5, window_bounds = array<i64: 1, 1, 10>}]} {
    %c0 = arith.constant 0 : index
    %c0_0 = arith.constant 0 : index
    %c0_1 = arith.constant 0 : index
    %c0_2 = arith.constant 0 : index
    %0 = vector.load %arg1[%c0, %c0_0, %c0_1, %c0_2] : memref<1x18x18x4xbf16, #tpu.memory_space<vmem>>, vector<1x16x16x4xbf16>
    %1 = vector.shape_cast %0 : vector<1x16x16x4xbf16> to vector<16x16x4xbf16>
    %c0_3 = arith.constant 0 : index
    %c0_4 = arith.constant 0 : index
    %c1 = arith.constant 1 : index
    %c0_5 = arith.constant 0 : index
    %2 = vector.load %arg1[%c0_3, %c0_4, %c1, %c0_5] : memref<1x18x18x4xbf16, #tpu.memory_space<vmem>>, vector<1x16x16x4xbf16>
    %3 = vector.shape_cast %2 : vector<1x16x16x4xbf16> to vector<16x16x4xbf16>
    %c0_6 = arith.constant 0 : index
    %c0_7 = arith.constant 0 : index
    %c2 = arith.constant 2 : index
    %c0_8 = arith.constant 0 : index
    %4 = vector.load %arg1[%c0_6, %c0_7, %c2, %c0_8] : memref<1x18x18x4xbf16, #tpu.memory_space<vmem>>, vector<1x16x16x4xbf16>
    %5 = vector.shape_cast %4 : vector<1x16x16x4xbf16> to vector<16x16x4xbf16>
    %c0_9 = arith.constant 0 : index
    %c1_10 = arith.constant 1 : index
    %c0_11 = arith.constant 0 : index
    %c0_12 = arith.constant 0 : index
    %6 = vector.load %arg1[%c0_9, %c1_10, %c0_11, %c0_12] : memref<1x18x18x4xbf16, #tpu.memory_space<vmem>>, vector<1x16x16x4xbf16>
    %7 = vector.shape_cast %6 : vector<1x16x16x4xbf16> to vector<16x16x4xbf16>
    %c0_13 = arith.constant 0 : index
    %c1_14 = arith.constant 1 : index
    %c1_15 = arith.constant 1 : index
    %c0_16 = arith.constant 0 : index
    %8 = vector.load %arg1[%c0_13, %c1_14, %c1_15, %c0_16] : memref<1x18x18x4xbf16, #tpu.memory_space<vmem>>, vector<1x16x16x4xbf16>
    %9 = vector.shape_cast %8 : vector<1x16x16x4xbf16> to vector<16x16x4xbf16>
    %c0_17 = arith.constant 0 : index
    %c1_18 = arith.constant 1 : index
    %c2_19 = arith.constant 2 : index
    %c0_20 = arith.constant 0 : index
    %10 = vector.load %arg1[%c0_17, %c1_18, %c2_19, %c0_20] : memref<1x18x18x4xbf16, #tpu.memory_space<vmem>>, vector<1x16x16x4xbf16>
    %11 = vector.shape_cast %10 : vector<1x16x16x4xbf16> to vector<16x16x4xbf16>
    %c0_21 = arith.constant 0 : index
    %c2_22 = arith.constant 2 : index
    %c0_23 = arith.constant 0 : index
    %c0_24 = arith.constant 0 : index
    %12 = vector.load %arg1[%c0_21, %c2_22, %c0_23, %c0_24] : memref<1x18x18x4xbf16, #tpu.memory_space<vmem>>, vector<1x16x16x4xbf16>
    %13 = vector.shape_cast %12 : vector<1x16x16x4xbf16> to vector<16x16x4xbf16>
    %c0_25 = arith.constant 0 : index
    %c2_26 = arith.constant 2 : index
    %c1_27 = arith.constant 1 : index
    %c0_28 = arith.constant 0 : index
    %14 = vector.load %arg1[%c0_25, %c2_26, %c1_27, %c0_28] : memref<1x18x18x4xbf16, #tpu.memory_space<vmem>>, vector<1x16x16x4xbf16>
    %15 = vector.shape_cast %14 : vector<1x16x16x4xbf16> to vector<16x16x4xbf16>
    %c0_29 = arith.constant 0 : index
    %c2_30 = arith.constant 2 : index
    %c2_31 = arith.constant 2 : index
    %c0_32 = arith.constant 0 : index
    %16 = vector.load %arg1[%c0_29, %c2_30, %c2_31, %c0_32] : memref<1x18x18x4xbf16, #tpu.memory_space<vmem>>, vector<1x16x16x4xbf16>
    %17 = vector.shape_cast %16 : vector<1x16x16x4xbf16> to vector<16x16x4xbf16>
    %18 = tpu.concatenate %1, %3, %5, %7, %9, %11, %13, %15, %17 in 2 : vector<16x16x4xbf16>, vector<16x16x4xbf16>, vector<16x16x4xbf16>, vector<16x16x4xbf16>, vector<16x16x4xbf16>, vector<16x16x4xbf16>, vector<16x16x4xbf16>, vector<16x16x4xbf16>, vector<16x16x4xbf16> -> vector<16x16x36xbf16>
    %19 = vector.shape_cast %18 : vector<16x16x36xbf16> to vector<256x36xbf16>
    %c0_33 = arith.constant 0 : index
    %c0_34 = arith.constant 0 : index
    %20 = vector.load %arg2[%c0_33, %c0_34] : memref<36x16xbf16, #tpu.memory_space<vmem>>, vector<36x16xbf16>
    %cst = arith.constant dense<0.000000e+00> : vector<256x16xf32>
    %21 = tpu.matmul %19, %20, %cst {dimension_numbers = #tpu.dot_dimension_numbers<[1], [0], [0], [1], [0, 0, 1, 1], [], []>} : vector<256x36xbf16>, vector<36x16xbf16>, vector<256x16xf32> -> vector<256x16xf32>
    %c0_35 = arith.constant 0 : index
    %c0_36 = arith.constant 0 : index
    %22 = vector.load %arg3[%c0_35, %c0_36] : memref<1x16xf32, #tpu.memory_space<vmem>>, vector<1x16xf32>
    %23 = vector.broadcast %22 : vector<1x16xf32> to vector<256x16xf32>
    %24 = arith.addf %21, %23 : vector<256x16xf32>
    %cst_37 = arith.constant 0.000000e+00 : f32
    %25 = vector.broadcast %cst_37 : f32 to vector<256x16xf32>
    %26 = arith.maximumf %24, %25 : vector<256x16xf32>
    %cst_38 = arith.constant dense<0.000000e+00> : vector<16xf32>
    %27 = vector.multi_reduction <add>, %26, %cst_38 [0] : vector<256x16xf32> to vector<16xf32>
    %28 = vector.shape_cast %27 : vector<16xf32> to vector<1x16xf32>
    %cst_39 = arith.constant 3.906250e-03 : f32
    %29 = vector.broadcast %cst_39 : f32 to vector<1x16xf32>
    %30 = arith.mulf %28, %29 : vector<1x16xf32>
    %c0_40 = arith.constant 0 : index
    %c0_41 = arith.constant 0 : index
    %31 = vector.load %arg4[%c0_40, %c0_41] : memref<16x10xf32, #tpu.memory_space<vmem>>, vector<16x10xf32>
    %cst_42 = arith.constant dense<0.000000e+00> : vector<1x10xf32>
    %32 = tpu.matmul %30, %31, %cst_42 {dimension_numbers = #tpu.dot_dimension_numbers<[1], [0], [0], [1], [0, 0, 1, 1], [], []>} : vector<1x16xf32>, vector<16x10xf32>, vector<1x10xf32> -> vector<1x10xf32>
    %c0_43 = arith.constant 0 : index
    %c0_44 = arith.constant 0 : index
    %33 = vector.load %arg5[%c0_43, %c0_44] : memref<1x10xf32, #tpu.memory_space<vmem>>, vector<1x10xf32>
    %34 = arith.addf %32, %33 : vector<1x10xf32>
    %c0_45 = arith.constant 0 : index
    %c0_46 = arith.constant 0 : index
    %c0_47 = arith.constant 0 : index
    %35 = vector.load %arg6[%c0_45, %c0_46, %c0_47] : memref<1x1x10xf32, #tpu.memory_space<vmem>>, vector<1x1x10xf32>
    %36 = vector.shape_cast %35 : vector<1x1x10xf32> to vector<1x10xf32>
    %37 = vector.shape_cast %34 : vector<1x10xf32> to vector<1x1x10xf32>
    tpu.vector_store %arg6[%c0_45, %c0_46, %c0_47], %37 {strides = array<i32>} : memref<1x1x10xf32, #tpu.memory_space<vmem>>, vector<1x1x10xf32>,
    return
  }
  func.func @transform_0(%arg0: i32) -> (i32, i32, i32, i32) {
    %c0_i32 = arith.constant 0 : i32
    %c0_i32_0 = arith.constant 0 : i32
    %c0_i32_1 = arith.constant 0 : i32
    %c0_i32_2 = arith.constant 0 : i32
    return %arg0, %c0_i32, %c0_i32_0, %c0_i32_1 : i32, i32, i32, i32
  }
  func.func @transform_1(%arg0: i32) -> (i32, i32) {
    %c0_i32 = arith.constant 0 : i32
    %c0_i32_0 = arith.constant 0 : i32
    %c0_i32_1 = arith.constant 0 : i32
    return %c0_i32, %c0_i32_0 : i32, i32
  }
  func.func @transform_2(%arg0: i32) -> (i32, i32) {
    %c0_i32 = arith.constant 0 : i32
    %c0_i32_0 = arith.constant 0 : i32
    %c0_i32_1 = arith.constant 0 : i32
    return %c0_i32, %c0_i32_0 : i32, i32
  }
  func.func @transform_3(%arg0: i32) -> (i32, i32) {
    %c0_i32 = arith.constant 0 : i32
    %c0_i32_0 = arith.constant 0 : i32
    %c0_i32_1 = arith.constant 0 : i32
    return %c0_i32, %c0_i32_0 : i32, i32
  }
  func.func @transform_4(%arg0: i32) -> (i32, i32) {
    %c0_i32 = arith.constant 0 : i32
    %c0_i32_0 = arith.constant 0 : i32
    %c0_i32_1 = arith.constant 0 : i32
    return %c0_i32, %c0_i32_0 : i32, i32
  }
  func.func @transform_5(%arg0: i32) -> (i32, i32, i32) {
    %c0_i32 = arith.constant 0 : i32
    %c0_i32_0 = arith.constant 0 : i32
    %c0_i32_1 = arith.constant 0 : i32
    return %arg0, %c0_i32, %c0_i32_0 : i32, i32, i32
  }
}

</mosaic_0001>

<bundles_post_ra>
// kernel: composable_model_forward.1
= control target key start
LH: loop header
LB: loop body
LE: loop exit
PB: predicated region body
PF: predicated region fallthrough
CT: control target
= control target key end

     0   :  { %10 = vsyncpa [#allocation3], 0  ;;  %s4570_s0 = inlined_call_operand.vmem [shape: bf16[2,18,18,4], index: 0, kind: input, shape index: {}]   ;;  %s4571_s1 = inlined_call_operand.vmem [shape: bf16[36,16], index: 1, kind: input, shape index: {}]   ;;  %s4572_s2 = inlined_call_operand.vmem [shape: f32[1,16], index: 2, kind: input, shape index: {}]   ;;  %s4573_s3 = inlined_call_operand.vmem [shape: f32[16,10], index: 3, kind: input, shape index: {}]   ;;  %s4574_s4 = inlined_call_operand.vmem [shape: f32[1,10], index: 4, kind: input, shape index: {}]   ;;  %s4575_s5 = inlined_call_operand.hbm [shape: f32[2,1,10], index: 5, kind: output, shape index: {}]  }
   0x1   :  { %12 = vsyncpa [#allocation3 + $0x1], 0  ;;  %s3343_s18 = smov 0   ;;  %s3345_s19 = smov 0  }
   0x2   :  { %s3347_s20 = smov 0   ;;  %s3349_s21 = smov 0  }
   0x3 LB: > { %s3364_s22 = sadd.s32 4294967295, %s3299_s21   ;;  %s2660_s23 = sadd.s32 4294967294, %s3299_s21   ;;  %s3299_s21 = sphi %s3349_s21, %s4581_s21   ;;  %s3295_s20 = sphi %s3347_s20, %s4580_s20   ;;  %s3291_s19 = sphi %s3345_s19, %s4579_s19   ;;  %s3287_s18 = sphi %s3343_s18, %s4578_s18  }
   0x4   : > { %s3368_s24 = sadd.s32 1, %s3299_s21   ;;  %s135_s25 = sadd.s32 1, %s3295_s20 }
   0x5   : > { %s132_s26 = ssub.s32 %s3299_s21, %s3368_s24  ;;  %p145_p0 = scmp.ne.s32.totalorder %s3295_s20, %s3291_s19 }
   0x6   : > { %p133_p1 = scmp.eq.s32.totalorder %s132_s26, 0  ;;  %p146_p2 = scmp.eq.s32.totalorder %s3364_s22, 1 }
   0x7   : > { %p151_p3 = scmp.ne.s32.totalorder %s3291_s19, %s3287_s18  ;;  %p152_p4 = scmp.eq.s32.totalorder %s2660_s23, 1 }
   0x8   : > { %s3379_s27 = scalar_select %p133_p1, %s3295_s20, %s135_s25  }
   0x9   : > { %p3381_p5 = por %p146_p2, %p145_p0  ;;  %p3385_p6 = por %p152_p4, %p151_p3 }
   0xa   : > { %p2663_p7 = scmp.ge.s32.totalorder %s3299_s21, 1  ;;  %p190_p8 = scmp.lt.s32.totalorder %s3299_s21, 3 }
   0xc   : > { %p191_p9 = pnand %p2663_p7, %p190_p8 }
   0xd   : > { %p217_p10 = scmp.lt.s32.totalorder (!%p191_p9), %s3364_s22, 1  ;;  %vm818_vm0 = vcmask (!%p191_p9), 1046528   ;;  %s3301_s10 = smov (!%p191_p9), 12   ;;  %vm545_vm1 = vsmask.f32 (!%p191_p9), 7424  ;;  %v3168_v57 = vld [vmem:[%s4571_s1] sm:$0xff] (!%p191_p9)  }
   0xe   : > { %194 = sbr.rel (%p191_p9) target bundleno = 870 (0x366), region = 40  ;;  %s3302_s11 = smov (!%p191_p9), 20   ;;  %2983 = vmatprep.subr.bf16.mxu0 (!%p191_p9), %v3168_v57  ;;  %3031 = vmatprep.subr.bf16.mxu1 (!%p191_p9), %v3168_v57  ;;  %vm2247_vm2 = vcmask (!%p191_p9), 1041408   ;;  %vm1923_vm3 = vcmask (!%p191_p9), 31744   ;;  %vm1956_vm4 = vcmask (!%p191_p9), 64512   ;;  %vm1989_vm5 = vcmask (!%p191_p9), 97280  }
   0xf   : > { %s3303_s12 = smov (!%p191_p9), 8   ;;  %s3304_s15 = smov (!%p191_p9), 4   ;;  %2984 = vmatpush3.bf16.msra.mxu0 (!%p191_p9), %v3168_v57  ;;  %3034 = vmatpush3.bf16.msra.mxu1 (!%p191_p9), %v3168_v57  ;;  %vm2022_vm6 = vcmask (!%p191_p9), 130048   ;;  %vm2055_vm7 = vcmask (!%p191_p9), 162816   ;;  %vm2088_vm8 = vcmask (!%p191_p9), 195584   ;;  %vm2121_vm9 = vcmask (!%p191_p9), 228352  }
  0x10   : > { %s3305_s23 = smov (!%p191_p9), 16   ;;  %s3306_s25 = smov (!%p191_p9), 24   ;;  %vm2154_vm10 = vcmask (!%p191_p9), 261120   ;;  %vm2214_vm11 = vcmask (!%p191_p9), 293888   ;;  %vm3310_vm12 = vmmov (!%p191_p9), 0   ;;  %vm2590_vm13 = vcmask (!%p191_p9), 73728  }
  0x11   : > { %s3307_s26 = smov (!%p191_p9), 28   ;;  %s215_s14 = sand.u32 (!%p191_p9), 1, %s3291_s19  }
  0x12   : > { %s2958_s17 = sshll.u32 (!%p191_p9), %s3364_s22, 4  ;;  %s2593_s7 = scalar_lea.sflag (!%p191_p9), [#allocation3], %s215_s14 }
  0x15   : > { %s218_s30 = scalar_select %p217_p10, %s3364_s22, 1 }
  0x16   : > { %s3312_s22 = smov [#allocation2]  }
  0x17   : > { %s3039_s6 = smul.u32 216, %s218_s30  ;;  %s3308_s30 = smov 32  }
  0x19   : > { %s3396_s9 = scalar_lea.vmem %s4570_s0, %s3039_s6  ;;  %s4528_s6 = scalar_lea.hbm %s4575_s5, %s2958_s17 }
  0x1a   : > { %v2667_v0 = vld [vmem:[%s3396_s9 + $0x18] sm:$0xf]  ;;  %v2668_v1 = vld [vmem:[%s3396_s9 + $0x1c] sm:$0xf]  ;;  %v2665_v5 = vld [vmem:[%s3396_s9 + $0xc] sm:$0xf] }
  0x1b   : > { %v2714_v2 = vld [vmem:[%s3396_s9 + $0x18] sm:$0xe]  ;;  %v3401_v3 = vcombine.low %v2667_v0, %v2668_v1  ;;  %v2666_v6 = vld [vmem:[%s3396_s9 + $0x10] sm:$0xf]  ;;  %v2713_v7 = vld [vmem:[%s3396_s9 + $0xc] sm:$0xe] }
  0x1c   : > { %v2874_v4 = vcombine.low %v2714_v2, %v2668_v1  ;;  %v3406_v8 = vcombine.low %v2665_v5, %v2666_v6  ;;  %v2873_v9 = vcombine.low %v2713_v7, %v2666_v6  ;;  %v3409_v10 = vld [vmem:[%s3396_s9 + $0x14] ss:$0 sps:$4 sm:$0x11]   ;;  %v224_v12 = vld [vmem:[%s3396_s9 + $0x4] sm:$0xf] }
  0x1d   : > { %981 = vrot.lane.b32.xlu1 %v3401_v3, %s3301_s10  ;;  %v1074_v11 = vshll.u32 %v3401_v3, 16  ;;  %v1332_v15 = vrot.slane %v3409_v10, 1  ;;  %v271_v16 = vld [vmem:[%s3396_s9] sm:$0xe]  ;;  %v1072_v21 = vshrl.u32 %v3401_v3, 16  ;;  %v1067_v60 = vshll.u32 %v3409_v10, 16 }
  0x1e   : > { %979 = vrot.lane.b32.xlu0 %v3406_v8, %s3301_s10  ;;  %v1062_v13 = vshll.u32 %v3406_v8, 16  ;;  %v1331_v14 = vrot.slane %v2873_v9, 1  ;;  %v1334_v17 = vrot.slane %v2874_v4, 1  ;;  %v3095_v18 = vld [vmem:[%s3396_s9 + $0x8] ss:$0 sps:$4 sm:$0x11]   ;;  %v2825_v19 = vcombine.low %v271_v16, %v224_v12 }
  0x1f   : > { %v223_v20 = vld [vmem:[%s3396_s9] sm:$0xf]  ;;  %v225_v24 = vld [vmem:[%s3396_s9 + $0xc] sm:$0xf]  ;;  %v226_v25 = vld [vmem:[%s3396_s9 + $0x10] sm:$0xf] }
  0x20   : > { %v1333_v22 = vsel %vm818_vm0, %v1331_v14, %v1332_v15  ;;  %v3424_v23 = vcombine.low %v223_v20, %v224_v12  ;;  %v819_v26 = vrot.slane %v2825_v19, 1  ;;  %v820_v27 = vrot.slane %v3095_v18, 1  ;;  %v272_v28 = vld [vmem:[%s3396_s9 + $0xc] sm:$0xe]  ;;  %v2731_v43 = vld [vmem:[%s3396_s9 + $0x24] sm:$0xf] }
  0x21   : > { %v3429_v29 = vcombine.low %v225_v24, %v226_v25  ;;  %v554_v30 = vshll.u32 %v3095_v18, 16  ;;  %v3099_v31 = vld [vmem:[%s3396_s9 + $0x14] ss:$0 sps:$4 sm:$0x11]   ;;  %v2826_v32 = vcombine.low %v272_v28, %v226_v25  ;;  %v1076_v35 = vrot.slane %v1074_v11, 1  ;;  %v3173_v12 = vld [vmem:[%s4571_s1 + $0x8] sm:$0xff]  }
  0x22   : > { %1379 = vrot.lane.b32.xlu0 %v1333_v22, %s3302_s11  ;;  %v547_v33 = vshrl.u32 %v3424_v23, 16  ;;  %v549_v34 = vshll.u32 %v3424_v23, 16  ;;  %v821_v36 = vsel %vm818_vm0, %v819_v26, %v820_v27  ;;  %v3101_v38 = vld [vmem:[%s3396_s9 + $0x20] ss:$0 sps:$4 sm:$0x11]   ;;  %v823_v40 = vrot.slane %v3099_v31, 1  ;;  %2985 = vmatprep.subr.bf16.mxu0 %v3173_v12 }
  0x23   : > { %v556_v37 = vrot.slane %v554_v30, 1  ;;  %867 = vrot.lane.b32.xlu1 %v821_v36, %s3303_s12  ;;  %v822_v39 = vrot.slane %v2826_v32, 1  ;;  %v559_v42 = vshrl.u32 %v3429_v29, 16  ;;  %v1335_v44 = vrot.slane %v3101_v38, 1  ;;  %v3442_v48 = vld [vmem:[%s3396_s9 + $0x28] sm:$0xf]  ;;  %3032 = vmatprep.subr.bf16.mxu1 %v3173_v12 }
  0x24   : > { %v551_v41 = vrot.slane %v549_v34, 1  ;;  %v561_v45 = vshll.u32 %v3429_v29, 16  ;;  %v566_v46 = vshll.u32 %v3099_v31, 16  ;;  %v1079_v47 = vshll.u32 %v3101_v38, 16  ;;  %v2729_v53 = vld [vmem:[%s3396_s9 + $0x18] sm:$0xf]  ;;  %2986 = vmatpush3.bf16.msra.mxu0 %v3173_v12  ;;  %3035 = vmatpush3.bf16.msra.mxu1 %v3173_v12 }
  0x25   : > { %v824_v49 = vsel %vm818_vm0, %v822_v39, %v823_v40  ;;  %v1060_v51 = vshrl.u32 %v3406_v8, 16  ;;  %v1064_v52 = vrot.slane %v1062_v13, 1  ;;  %v3448_v56 = vld [vmem:[%s3396_s9 + $0x1c] sm:$0xf]  ;;  %v1077_v59 = vor.u32 %v1076_v35, %v1072_v21  ;;  %v2777_v6 = vld [vmem:[%s3396_s9 + $0x18] sm:$0xe] }
  0x26   : > { %v552_v50 = vor.u32 %v551_v41, %v547_v33  ;;  %v563_v54 = vrot.slane %v561_v45, 1  ;;  %v568_v55 = vrot.slane %v566_v46, 1  ;;  %v2890_v61 = vcombine.low %v2731_v43, %v3442_v48  ;;  %v3461_v2 = vld [vmem:[%s3396_s9 + $0x2c] ss:$0 sps:$4 sm:$0x11]  }
  0x27   : > { %869 = vrot.lane.b32.xlu1 %v824_v49, %s3303_s12  ;;  %v1336_v62 = vsel %vm818_vm0, %v1334_v17, %v1335_v44  ;;  %v1081_v0 = vrot.slane %v1079_v47, 1  ;;  %v2889_v1 = vcombine.low %v2729_v53, %v3448_v56  ;;  %v1065_v3 = vor.u32 %v1064_v52, %v1060_v51  ;;  %v3465_v7 = vld [vmem:[%s3396_s9 + $0x20] ss:$0 sps:$4 sm:$0x11]   ;;  %v227_v11 = vld [vmem:[%s3396_s9 + $0x18] sm:$0xf] }
  0x28   : > { %v557_v58 = vsel %vm545_vm1, %v552_v50, %v556_v37  ;;  %v564_v63 = vor.u32 %v563_v54, %v559_v42  ;;  %v1069_v4 = vrot.slane %v1067_v60, 1  ;;  %v1586_v5 = vshll.u32 %v2890_v61, 16  ;;  %v3475_v15 = vld [vmem:[%s3396_s9 + $0x1c] sm:$0xf]  ;;  %v229_v24 = vld [vmem:[%s3396_s9 + $0x24] sm:$0xf] }
  0x29   : > { %738 = vrot.lane.b32.xlu0 %v557_v58, %s3304_s15  ;;  %v1574_v9 = vshll.u32 %v2889_v1, 16  ;;  %v1584_v10 = vshrl.u32 %v2890_v61, 16  ;;  %v1591_v14 = vshll.u32 %v3461_v2, 16  ;;  %v1082_v16 = vsel %vm545_vm1, %v1077_v59, %v1081_v0  ;;  %v3483_v19 = vld [vmem:[%s3396_s9 + $0x20] ss:$0 sps:$4 sm:$0x11]  }
  0x2a   : > { %v569_v8 = vsel %vm545_vm1, %v564_v63, %v568_v55  ;;  %v1588_v13 = vrot.slane %v1586_v5, 1  ;;  %v1572_v17 = vshrl.u32 %v2889_v1, 16  ;;  %v3480_v18 = vcombine.low %v227_v11, %v3475_v15  ;;  %v230_v25 = vld [vmem:[%s3396_s9 + $0x28] sm:$0xf]  ;;  %v2778_v39 = vld [vmem:[%s3396_s9 + $0x24] sm:$0xe] }
  0x2b   : > { %1381 = vrot.lane.b32.xlu1 %v1336_v62, %s3302_s11  ;;  %v1070_v20 = vsel %vm545_vm1, %v1065_v3, %v1069_v4  ;;  %v1576_v21 = vrot.slane %v1574_v9, 1  ;;  %v1579_v22 = vshll.u32 %v3465_v7, 16  ;;  %v2921_v26 = vcombine.low %v2777_v6, %v3448_v56  ;;  %v3111_v35 = vld [vmem:[%s3396_s9 + $0x2c] ss:$0 sps:$4 sm:$0x11]  }
  0x2c   : > { %v573_v27 = vshll.u32 %v3480_v18, 16  ;;  %v1589_v28 = vor.u32 %v1588_v13, %v1584_v10  ;;  %v1593_v30 = vrot.slane %v1591_v14, 1  ;;  %v578_v31 = vshll.u32 %v3483_v19, 16  ;;  %v274_v44 = vld [vmem:[%s3396_s9 + $0x24] sm:$0xe] }
  0x2d   : > { %740 = vrot.lane.b32.xlu0 %v569_v8, %s3304_s15  ;;  %v3493_v32 = vcombine.low %v229_v24, %v230_v25  ;;  %v571_v33 = vshrl.u32 %v3480_v18, 16  ;;  %v1577_v36 = vor.u32 %v1576_v21, %v1572_v17  ;;  %v1581_v37 = vrot.slane %v1579_v22, 1  ;;  %v273_v50 = vld [vmem:[%s3396_s9 + $0x18] sm:$0xe]  ;;  %v2671_v53 = vld [vmem:[%s3396_s9 + $0x30] sm:$0xf] }
  0x2e   : > { %v575_v34 = vrot.slane %v573_v27, 1  ;;  %v1594_v40 = vsel %vm545_vm1, %v1589_v28, %v1593_v30  ;;  %v580_v41 = vrot.slane %v578_v31, 1  ;;  %v1843_v42 = vrot.slane %v2921_v26, 1  ;;  %v2672_v54 = vld [vmem:[%s3396_s9 + $0x34] sm:$0xf] }
  0x2f   : > { %1253 = vrot.lane.b32.xlu1 %v1082_v16, %s3305_s23  ;;  %v585_v38 = vshll.u32 %v3493_v32, 16  ;;  %v1844_v43 = vrot.slane %v3465_v7, 1  ;;  %v583_v46 = vshrl.u32 %v3493_v32, 16  ;;  %v590_v49 = vshll.u32 %v3111_v35, 16  ;;  %v2669_v55 = vld [vmem:[%s3396_s9 + $0x24] sm:$0xf] }
  0x30   : > { %v576_v45 = vor.u32 %v575_v34, %v571_v33  ;;  %v2922_v51 = vcombine.low %v2778_v39, %v3442_v48  ;;  %v1582_v52 = vsel %vm545_vm1, %v1577_v36, %v1581_v37  ;;  %v2670_v56 = vld [vmem:[%s3396_s9 + $0x28] sm:$0xf]  ;;  %v2828_v58 = vcombine.low %v274_v44, %v230_v25  ;;  %v3521_v3 = vld [vmem:[%s3396_s9 + $0x38] ss:$0 sps:$4 sm:$0x11]  }
  0x31   : > { %1251 = vrot.lane.b32.xlu0 %v1070_v20, %s3305_s23  ;;  %v587_v47 = vrot.slane %v585_v38, 1  ;;  %v1845_v57 = vsel %vm818_vm0, %v1843_v42, %v1844_v43  ;;  %v2844_v48 = vcombine.low %v2671_v53, %v2672_v54  ;;  %v1847_v63 = vrot.slane %v3461_v2, 1  ;;  %v3119_v11 = vld [vmem:[%s3396_s9 + $0x2c] ss:$0 sps:$4 sm:$0x11]  }
  0x32   : > { %v581_v59 = vsel %vm545_vm1, %v576_v45, %v580_v41  ;;  %v1846_v62 = vrot.slane %v2922_v51, 1  ;;  %v2827_v0 = vcombine.low %v273_v50, %v3475_v15  ;;  %v828_v5 = vrot.slane %v2828_v58, 1  ;;  %v2716_v12 = vld [vmem:[%s3396_s9 + $0x30] sm:$0xe]  ;;  %v2715_v13 = vld [vmem:[%s3396_s9 + $0x24] sm:$0xe] }
  0x33   : > { %1493 = vrot.lane.b32.xlu1 %v2890_v61, %s3306_s25  ;;  %v588_v60 = vor.u32 %v587_v47, %v583_v46  ;;  %v592_v61 = vrot.slane %v590_v49, 1  ;;  %v829_v6 = vrot.slane %v3111_v35, 1  ;;  %v1098_v7 = vshll.u32 %v2844_v48, 16  ;;  %v2735_v21 = vld [vmem:[%s3396_s9 + $0x3c] sm:$0xf] }
  0x34   : > { %v1848_v2 = vsel %vm818_vm0, %v1846_v62, %v1847_v63  ;;  %v825_v8 = vrot.slane %v2827_v0, 1  ;;  %v826_v9 = vrot.slane %v3483_v19, 1  ;;  %v1096_v14 = vshrl.u32 %v2844_v48, 16  ;;  %v3536_v22 = vld [vmem:[%s3396_s9 + $0x40] sm:$0xf] }
  0x35   : > { %1491 = vrot.lane.b32.xlu0 %v2889_v1, %s3306_s25  ;;  %v2843_v1 = vcombine.low %v2669_v55, %v2670_v56  ;;  %v593_v4 = vsel %vm545_vm1, %v588_v60, %v592_v61  ;;  %v1103_v15 = vshll.u32 %v3521_v3, 16  ;;  %v830_v16 = vsel %vm818_vm0, %v828_v5, %v829_v6  ;;  %v2733_v26 = vld [vmem:[%s3396_s9 + $0x30] sm:$0xf]  ;;  %v2734_v27 = vld [vmem:[%s3396_s9 + $0x34] sm:$0xf] }
  0x36   : > { %v1100_v17 = vrot.slane %v1098_v7, 1  ;;  %v827_v19 = vsel %vm818_vm0, %v825_v8, %v826_v9  ;;  %v1091_v25 = vshll.u32 %v3119_v11, 16  ;;  %v2876_v28 = vcombine.low %v2716_v12, %v2672_v54  ;;  %v231_v38 = vld [vmem:[%s3396_s9 + $0x30] sm:$0xf]  ;;  %v3546_v39 = vld [vmem:[%s3396_s9 + $0x34] sm:$0xf] }
  0x37   : > { %1765 = vrot.lane.b32.xlu1 %v1594_v40, %s3307_s26  ;;  %v1086_v10 = vshll.u32 %v2843_v1, 16  ;;  %v1084_v20 = vshrl.u32 %v2843_v1, 16  ;;  %v2875_v30 = vcombine.low %v2715_v13, %v2670_v56  ;;  %v2892_v31 = vcombine.low %v2735_v21, %v3536_v22  ;;  %v3551_v45 = vld [vmem:[%s3396_s9 + $0x44] ss:$0 sps:$4 sm:$0x11]  }
  0x38   : > { %v1101_v33 = vor.u32 %v1100_v17, %v1096_v14  ;;  %v1105_v34 = vrot.slane %v1103_v15, 1  ;;  %v2891_v35 = vcombine.low %v2733_v26, %v2734_v27  ;;  %v1093_v37 = vrot.slane %v1091_v25, 1  ;;  %v3125_v49 = vld [vmem:[%s3396_s9 + $0x38] ss:$0 sps:$4 sm:$0x11]  }
  0x39   : > { %1763 = vrot.lane.b32.xlu0 %v1582_v52, %s3307_s26  ;;  %v1088_v24 = vrot.slane %v1086_v10, 1  ;;  %v1340_v40 = vrot.slane %v2876_v28, 1  ;;  %v1341_v41 = vrot.slane %v3521_v3, 1  ;;  %v1337_v42 = vrot.slane %v2875_v30, 1  ;;  %v233_v52 = vld [vmem:[%s3396_s9 + $0x3c] sm:$0xf] }
  0x3a   : > { %v1338_v43 = vrot.slane %v3119_v11, 1  ;;  %v1610_v44 = vshll.u32 %v2892_v31, 16  ;;  %v1106_v46 = vsel %vm545_vm1, %v1101_v33, %v1105_v34  ;;  %v1598_v47 = vshll.u32 %v2891_v35, 16  ;;  %v234_v53 = vld [vmem:[%s3396_s9 + $0x40] sm:$0xf] }
  0x3b   : > { %742 = vrot.lane.b32.xlu1 %v581_v59, %s3304_s15  ;;  %v1089_v36 = vor.u32 %v1088_v24, %v1084_v20  ;;  %v3557_v50 = vcombine.low %v231_v38, %v3546_v39  ;;  %v1608_v54 = vshrl.u32 %v2892_v31, 16  ;;  %v1615_v56 = vshll.u32 %v3551_v45, 16  ;;  %v2779_v59 = vld [vmem:[%s3396_s9 + $0x30] sm:$0xe]  ;;  %v276_v24 = vld [vmem:[%s3396_s9 + $0x3c] sm:$0xe] }
  0x3c   : > { %v1612_v55 = vrot.slane %v1610_v44, 1  ;;  %v1342_v58 = vsel %vm818_vm0, %v1340_v40, %v1341_v41  ;;  %v3571_v61 = vcombine.low %v233_v52, %v234_v53  ;;  %v1596_v62 = vshrl.u32 %v2891_v35, 16  ;;  %v3129_v8 = vld [vmem:[%s3396_s9 + $0x44] ss:$0 sps:$4 sm:$0x11]  }
  0x3d   : > { %1891 = vrot.lane.b32.xlu0 %v1845_v57, %s3308_s30  ;;  %v1094_v51 = vsel %vm545_vm1, %v1089_v36, %v1093_v37  ;;  %v3565_v57 = vld [vmem:[%s3396_s9 + $0x38] ss:$0 sps:$4 sm:$0x11]   ;;  %v597_v60 = vshll.u32 %v3557_v50, 16  ;;  %v1600_v63 = vrot.slane %v1598_v47, 1  ;;  %v1603_v0 = vshll.u32 %v3125_v49, 16 }
  0x3e   : > { %v2923_v3 = vcombine.low %v2779_v59, %v2734_v27  ;;  %v1617_v5 = vrot.slane %v1615_v56, 1  ;;  %v602_v6 = vshll.u32 %v3565_v57, 16  ;;  %v595_v7 = vshrl.u32 %v3557_v50, 16  ;;  %v2676_v26 = vld [vmem:[%s3396_s9 + $0x4c] sm:$0xf] }
  0x3f   : > { %744 = vrot.lane.b32.xlu1 %v593_v4, %s3304_s15  ;;  %v1613_v4 = vor.u32 %v1612_v55, %v1608_v54  ;;  %v609_v9 = vshll.u32 %v3571_v61, 16  ;;  %v1601_v10 = vor.u32 %v1600_v63, %v1596_v62  ;;  %v1605_v11 = vrot.slane %v1603_v0, 1  ;;  %v275_v27 = vld [vmem:[%s3396_s9 + $0x30] sm:$0xe]  ;;  %v2673_v28 = vld [vmem:[%s3396_s9 + $0x3c] sm:$0xf] }
  0x40   : > { %v604_v14 = vrot.slane %v602_v6, 1  ;;  %v1849_v15 = vrot.slane %v2923_v3, 1  ;;  %v607_v20 = vshrl.u32 %v3571_v61, 16  ;;  %v2674_v30 = vld [vmem:[%s3396_s9 + $0x40] sm:$0xf]  ;;  %v2830_v33 = vcombine.low %v276_v24, %v234_v53 }
  0x41   : > { %1893 = vrot.lane.b32.xlu0 %v1848_v2, %s3308_s30  ;;  %v599_v2 = vrot.slane %v597_v60, 1  ;;  %v1618_v13 = vsel %vm545_vm1, %v1613_v4, %v1617_v5  ;;  %v611_v21 = vrot.slane %v609_v9, 1  ;;  %v1606_v25 = vsel %vm545_vm1, %v1601_v10, %v1605_v11  ;;  %v3137_v53 = vld [vmem:[%s3396_s9 + $0x44] ss:$0 sps:$4 sm:$0x11]  }
  0x42   : > { %v1853_v40 = vrot.slane %v3551_v45, 1  ;;  %v2829_v41 = vcombine.low %v275_v27, %v3546_v39  ;;  %v834_v44 = vrot.slane %v2830_v33, 1  ;;  %v832_v52 = vrot.slane %v3565_v57, 1  ;;  %v2739_v54 = vld [vmem:[%s3396_s9 + $0x54] sm:$0xf] }
  0x43   : > { %873 = vrot.lane.b32.xlu1 %v830_v16, %s3303_s12  ;;  %v1850_v16 = vrot.slane %v3125_v49, 1  ;;  %v600_v17 = vor.u32 %v599_v2, %v595_v7  ;;  %v3136_v49 = vld [vmem:[%s3396_s9 + $0x50] ss:$0 sps:$4 sm:$0x11]   ;;  %v3609_v55 = vld [vmem:[%s3396_s9 + $0x58] sm:$0xf] }
  0x44   : > { %v831_v45 = vrot.slane %v2829_v41, 1  ;;  %v2717_v62 = vld [vmem:[%s3396_s9 + $0x3c] sm:$0xe]  ;;  %v2894_v3 = vcombine.low %v2739_v54, %v3609_v55  ;;  %v2737_v4 = vld [vmem:[%s3396_s9 + $0x48] sm:$0xf] }
  0x45   : > { %871 = vrot.lane.b32.xlu0 %v827_v19, %s3303_s12  ;;  %v614_v19 = vshll.u32 %v3129_v8, 16  ;;  %v605_v34 = vsel %vm545_vm1, %v600_v17, %v604_v14  ;;  %v1851_v38 = vsel %vm818_vm0, %v1849_v15, %v1850_v16  ;;  %v3619_v5 = vld [vmem:[%s3396_s9 + $0x4c] sm:$0xf]  ;;  %v2877_v7 = vcombine.low %v2717_v62, %v2674_v30  ;;  %v235_v9 = vld [vmem:[%s3396_s9 + $0x48] sm:$0xf] }
  0x46   : > { %v833_v57 = vsel %vm818_vm0, %v831_v45, %v832_v52  ;;  %v3625_v10 = vld [vmem:[%s3396_s9 + $0x4c] sm:$0xf]  ;;  %v1634_v14 = vshll.u32 %v2894_v3, 16  ;;  %v1347_v16 = vrot.slane %v3136_v49, 1  ;;  %v237_v27 = vld [vmem:[%s3396_s9 + $0x54] sm:$0xf] }
  0x47   : > { %985 = vrot.lane.b32.xlu1 %v2844_v48, %s3301_s10  ;;  %v1339_v48 = vsel %vm818_vm0, %v1337_v42, %v1338_v43  ;;  %v616_v36 = vrot.slane %v614_v19, 1  ;;  %v2845_v42 = vcombine.low %v2673_v28, %v2674_v30  ;;  %v3630_v17 = vld [vmem:[%s3396_s9 + $0x5c] ss:$0 sps:$4 sm:$0x11]   ;;  %v1343_v19 = vrot.slane %v2877_v7, 1 }
  0x48   : > { %v3638_v24 = vld [vmem:[%s3396_s9 + $0x50] ss:$0 sps:$4 sm:$0x11]   ;;  %v3643_v28 = vld [vmem:[%s3396_s9 + $0x58] sm:$0xf]  ;;  %v1632_v30 = vshrl.u32 %v2894_v3, 16 }
  0x49   : > { %983 = vrot.lane.b32.xlu0 %v2843_v1, %s3301_s10  ;;  %v2780_v1 = vld [vmem:[%s3396_s9 + $0x3c] sm:$0xe]  ;;  %v1110_v39 = vshll.u32 %v2845_v42, 16  ;;  %v1108_v63 = vshrl.u32 %v2845_v42, 16  ;;  %v1639_v33 = vshll.u32 %v3630_v17, 16 }
  0x4a   : > { %v2924_v12 = vcombine.low %v2780_v1, %v3536_v22  ;;  %v2675_v22 = vld [vmem:[%s3396_s9 + $0x48] sm:$0xf]  ;;  %v1115_v1 = vshll.u32 %v3137_v53, 16  ;;  %v3147_v52 = vld [vmem:[%s3396_s9 + $0x5c] ss:$0 sps:$4 sm:$0x11]  }
  0x4b   : > { %1257 = vrot.lane.b32.xlu1 %v1106_v46, %s3305_s23  ;;  %v2846_v37 = vcombine.low %v2675_v22, %v2676_v26  ;;  %v835_v46 = vrot.slane %v3129_v8, 1  ;;  %v1112_v0 = vrot.slane %v1110_v39, 1  ;;  %v1344_v22 = vrot.slane %v3137_v53, 1  ;;  %v2679_v62 = vld [vmem:[%s3396_s9 + $0x60] sm:$0xf] }
  0x4c   : > { %v277_v7 = vld [vmem:[%s3396_s9 + $0x48] sm:$0xe] }
  0x4d   : > { %1255 = vrot.lane.b32.xlu0 %v1094_v51, %s3305_s23  ;;  %v1122_v47 = vshll.u32 %v2846_v37, 16  ;;  %v836_v56 = vsel %vm818_vm0, %v834_v44, %v835_v46  ;;  %v1120_v59 = vshrl.u32 %v2846_v37, 16  ;;  %v1113_v11 = vor.u32 %v1112_v0, %v1108_v63  ;;  %v2781_v44 = vld [vmem:[%s3396_s9 + $0x48] sm:$0xe] }
  0x4e   : > { %v2925_v53 = vcombine.low %v2781_v44, %v3619_v5 }
  0x4f   : > { %1385 = vrot.lane.b32.xlu1 %v1342_v58, %s3302_s11  ;;  %v2718_v58 = vld [vmem:[%s3396_s9 + $0x48] sm:$0xe]  ;;  %v1124_v60 = vrot.slane %v1122_v47, 1  ;;  %v1641_v47 = vrot.slane %v1639_v33, 1 }
  0x50   : > { %v2878_v6 = vcombine.low %v2718_v58, %v2676_v26  ;;  %v3176_v58 = vld [vmem:[%s4571_s1 + $0x10] ss:$0 sps:$4 sm:$0x33]  }
  0x51   : > { %1383 = vrot.lane.b32.xlu0 %v1339_v48, %s3302_s11  ;;  %v1127_v48 = vshll.u32 %v3136_v49, 16  ;;  %v1125_v2 = vor.u32 %v1124_v60, %v1120_v59  ;;  %3037 = vmatprep.subr.msk.bf16.mxu0 %vm2247_vm2, %v3176_v58 }
  0x52   : > { %v1346_v15 = vrot.slane %v2878_v6, 1  ;;  %v1856_v6 = vrot.slane %v3638_v24, 1  ;;  %3038 = vmatprep.subr.msk.bf16.mxu1 %vm2247_vm2, %v3176_v58 }
  0x53   : > { %1497 = vrot.lane.b32.xlu1 %v2892_v31, %s3306_s25  ;;  %v1852_v31 = vrot.slane %v2924_v12, 1  ;;  %v1129_v8 = vrot.slane %v1127_v48, 1  ;;  %v1117_v12 = vrot.slane %v1115_v1, 1 }
  0x55   : > { %1495 = vrot.lane.b32.xlu0 %v2891_v35, %s3306_s25  ;;  %v612_v35 = vor.u32 %v611_v21, %v607_v20  ;;  %v1854_v51 = vsel %vm818_vm0, %v1852_v31, %v1853_v40  ;;  %v3633_v20 = vcombine.low %v235_v9, %v3625_v10  ;;  %v1130_v21 = vsel %vm545_vm1, %v1125_v2, %v1129_v8  ;;  %v2677_v2 = vld [vmem:[%s3396_s9 + $0x54] sm:$0xf]  ;;  %v3685_v8 = vld [vmem:[%s3396_s9 + $0x58] sm:$0xf] }
  0x56   : > { %v1636_v31 = vrot.slane %v1634_v14, 1  ;;  %v2249_v9 = vsel %vm2247_vm2, %v3176_v58, 0 }
  0x57   : > { %1769 = vrot.lane.b32.xlu1 %v1618_v13, %s3307_s26  ;;  %v617_v43 = vsel %vm545_vm1, %v612_v35, %v616_v36  ;;  %v2893_v13 = vcombine.low %v2737_v4, %v3619_v5  ;;  %v621_v35 = vshll.u32 %v3633_v20, 16  ;;  %v1348_v36 = vsel %vm818_vm0, %v1346_v15, %v1347_v16  ;;  %v3678_v5 = vld [vmem:[%s3396_s9 + $0x64] sm:$0xf]  ;;  %2988 = vmatpush3.bf16.msra.mxu0 %v2249_v9 }
  0x58   : > { %v1637_v46 = vor.u32 %v1636_v31, %v1632_v30  ;;  %v619_v49 = vshrl.u32 %v3633_v20, 16  ;;  %v638_v4 = vshll.u32 %v3147_v52, 16  ;;  %3036 = vmatpush3.bf16.msra.mxu1 %v2249_v9  ;;  %v3154_v30 = vld [vmem:[%s3396_s9 + $0x68] ss:$0 sps:$4 sm:$0x11]  }
  0x59   : > { %1767 = vrot.lane.b32.xlu0 %v1606_v25, %s3307_s26  ;;  %v1118_v25 = vsel %vm545_vm1, %v1113_v11, %v1117_v12  ;;  %v1622_v26 = vshll.u32 %v2893_v13, 16  ;;  %v1620_v40 = vshrl.u32 %v2893_v13, 16  ;;  %v2848_v12 = vcombine.low %v2679_v62, %v3678_v5  ;;  %v3155_v31 = vld [vmem:[%s3396_s9 + $0x5c] ss:$0 sps:$4 sm:$0x11]  }
  0x5a   : > { %v1642_v60 = vsel %vm545_vm1, %v1637_v46, %v1641_v47  ;;  %v640_v15 = vrot.slane %v638_v4, 1  ;;  %v1151_v44 = vshll.u32 %v3154_v30, 16  ;;  %v1139_v46 = vshll.u32 %v3155_v31, 16  ;;  %v3722_v62 = vld [vmem:[%s3396_s9 + $0x64] sm:$0xf] }
  0x5b   : > { %746 = vrot.lane.b32.xlu1 %v605_v34, %s3304_s15  ;;  %v3648_v34 = vld [vmem:[%s3396_s9 + $0x50] ss:$0 sps:$4 sm:$0x11]   ;;  %v1624_v41 = vrot.slane %v1622_v26, 1  ;;  %v841_v26 = vrot.slane %v3147_v52, 1 }
  0x5c   : > { %v626_v45 = vshll.u32 %v3648_v34, 16  ;;  %v838_v33 = vrot.slane %v3648_v34, 1  ;;  %v2719_v34 = vld [vmem:[%s3396_s9 + $0x54] sm:$0xe]  ;;  %v2741_v52 = vld [vmem:[%s3396_s9 + $0x60] sm:$0xf] }
  0x5d   : > { %1895 = vrot.lane.b32.xlu0 %v1851_v38, %s3308_s30  ;;  %v1345_v38 = vsel %vm818_vm0, %v1343_v19, %v1344_v22  ;;  %v1625_v54 = vor.u32 %v1624_v41, %v1620_v40  ;;  %v1859_v19 = vrot.slane %v3630_v17, 1  ;;  %v3707_v40 = vld [vmem:[%s3396_s9 + $0x70] sm:$0xf]  ;;  %v2720_v41 = vld [vmem:[%s3396_s9 + $0x60] sm:$0xe]  ;;  %v1153_v58 = vrot.slane %v1151_v44, 1 }
  0x5e   : > { %v628_v48 = vrot.slane %v626_v45, 1  ;;  %v241_v9 = vld [vmem:[%s3396_s9 + $0x6c] sm:$0xf] }
  0x5f   : > { %748 = vrot.lane.b32.xlu1 %v617_v43, %s3304_s15  ;;  %v2782_v43 = vld [vmem:[%s3396_s9 + $0x54] sm:$0xe]  ;;  %v2784_v44 = vld [vmem:[%s3396_s9 + $0x6c] sm:$0xe] }
  0x60   : > { %v2926_v59 = vcombine.low %v2782_v43, %v3609_v55 }
  0x61   : > { %1897 = vrot.lane.b32.xlu0 %v1854_v51, %s3308_s30  ;;  %v623_v51 = vrot.slane %v621_v35, 1 }
  0x62   : > { %v1858_v16 = vrot.slane %v2926_v59, 1  ;;  %v1141_v59 = vrot.slane %v1139_v46, 1 }
  0x63   : > { %877 = vrot.lane.b32.xlu1 %v836_v56, %s3303_s12  ;;  %v624_v63 = vor.u32 %v623_v51, %v619_v49 }
  0x65   : > { %875 = vrot.lane.b32.xlu0 %v833_v57, %s3303_s12  ;;  %v278_v57 = vld [vmem:[%s3396_s9 + $0x54] sm:$0xe] }
  0x66   : > { %v2832_v11 = vcombine.low %v278_v57, %v3643_v28  ;;  %v239_v57 = vld [vmem:[%s3396_s9 + $0x60] sm:$0xf] }
  0x67   : > { %989 = vrot.lane.b32.xlu1 %v2846_v37, %s3301_s10  ;;  %v3654_v37 = vcombine.low %v237_v27, %v3643_v28  ;;  %v1146_v27 = vshll.u32 %v2848_v12, 16 }
  0x68   : > { %v840_v22 = vrot.slane %v2832_v11, 1  ;;  %v3737_v11 = vld [vmem:[%s3396_s9 + $0x70] sm:$0xf] }
  0x69   : > { %987 = vrot.lane.b32.xlu0 %v2845_v42, %s3301_s10  ;;  %v1627_v42 = vshll.u32 %v3638_v24, 16  ;;  %v633_v39 = vshll.u32 %v3654_v37, 16  ;;  %v631_v0 = vshrl.u32 %v3654_v37, 16  ;;  %v2831_v24 = vcombine.low %v277_v7, %v3625_v10 }
  0x6a   : > { %v1860_v10 = vsel %vm818_vm0, %v1858_v16, %v1859_v19  ;;  %v1148_v43 = vrot.slane %v1146_v27, 1 }
  0x6b   : > { %1261 = vrot.lane.b32.xlu1 %v1130_v21, %s3305_s23  ;;  %v1629_v56 = vrot.slane %v1627_v42, 1  ;;  %v635_v1 = vrot.slane %v633_v39, 1  ;;  %v837_v17 = vrot.slane %v2831_v24, 1  ;;  %v1144_v42 = vshrl.u32 %v2848_v12, 16  ;;  %v2742_v39 = vld [vmem:[%s3396_s9 + $0x64] sm:$0xf] }
  0x6c   : > { %v3749_v24 = vcombine.low %v241_v9, %v3737_v11 }
  0x6d   : > { %1259 = vrot.lane.b32.xlu0 %v1118_v25, %s3305_s23  ;;  %v1630_v55 = vsel %vm545_vm1, %v1625_v54, %v1629_v56  ;;  %v636_v14 = vor.u32 %v635_v1, %v631_v0  ;;  %v2847_v25 = vcombine.low %v2677_v2, %v3685_v8  ;;  %v839_v47 = vsel %vm818_vm0, %v837_v17, %v838_v33  ;;  %v3726_v1 = vld [vmem:[%s3396_s9 + $0x74] ss:$0 sps:$4 sm:$0x11]  }
  0x6e   : > { %v2879_v54 = vcombine.low %v2719_v34, %v3685_v8  ;;  %v1149_v56 = vor.u32 %v1148_v43, %v1144_v42  ;;  %v1350_v2 = vrot.slane %v3155_v31, 1  ;;  %v1865_v9 = vrot.slane %v3726_v1, 1 }
  0x6f   : > { %1389 = vrot.lane.b32.xlu1 %v1348_v36, %s3302_s11  ;;  %v641_v28 = vsel %vm545_vm1, %v636_v14, %v640_v15  ;;  %v1134_v35 = vshll.u32 %v2847_v25, 16  ;;  %v842_v36 = vsel %vm818_vm0, %v840_v22, %v841_v26  ;;  %v1132_v49 = vshrl.u32 %v2847_v25, 16  ;;  %v3742_v15 = vld [vmem:[%s3396_s9 + $0x68] ss:$0 sps:$4 sm:$0x11]  }
  0x70   : > { %v1154_v4 = vsel %vm545_vm1, %v1149_v56, %v1153_v58  ;;  %v1663_v14 = vshll.u32 %v3726_v1, 16  ;;  %v650_v33 = vshll.u32 %v3742_v15, 16  ;;  %v2928_v58 = vcombine.low %v2784_v44, %v3707_v40 }
  0x71   : > { %1387 = vrot.lane.b32.xlu0 %v1345_v38, %s3302_s11  ;;  %v2743_v38 = vld [vmem:[%s3396_s9 + $0x6c] sm:$0xf]  ;;  %v1136_v51 = vrot.slane %v1134_v35, 1 }
  0x72   : > { %v2896_v45 = vcombine.low %v2743_v38, %v3707_v40  ;;  %v1665_v17 = vrot.slane %v1663_v14, 1  ;;  %v3165_v38 = vld [vmem:[%s3396_s9 + $0x74] ss:$0 sps:$4 sm:$0x11]  }
  0x73   : > { %1501 = vrot.lane.b32.xlu1 %v2894_v3, %s3306_s25  ;;  %v1855_v3 = vrot.slane %v2925_v53, 1  ;;  %v2880_v53 = vcombine.low %v2720_v41, %v3678_v5  ;;  %v1353_v5 = vrot.slane %v3154_v30, 1  ;;  %v657_v41 = vshll.u32 %v3749_v24, 16 }
  0x74   : > { %v662_v56 = vshll.u32 %v3165_v38, 16  ;;  %v847_v14 = vrot.slane %v3165_v38, 1 }
  0x75   : > { %1499 = vrot.lane.b32.xlu0 %v2893_v13, %s3306_s25  ;;  %v629_v13 = vsel %vm545_vm1, %v624_v63, %v628_v48  ;;  %v1857_v21 = vsel %vm818_vm0, %v1855_v3, %v1856_v6  ;;  %v2895_v48 = vcombine.low %v2741_v52, %v2742_v39  ;;  %v1658_v63 = vshll.u32 %v2896_v45, 16  ;;  %v3161_v3 = vld [vmem:[%s3396_s9 + $0x68] ss:$0 sps:$4 sm:$0x11]  }
  0x76   : > { %v1352_v0 = vrot.slane %v2880_v53, 1  ;;  %v3732_v6 = vcombine.low %v239_v57, %v3722_v62  ;;  %v1651_v27 = vshll.u32 %v3161_v3, 16  ;;  %v655_v53 = vshrl.u32 %v3749_v24, 16  ;;  %v2683_v57 = vld [vmem:[%s3396_s9 + $0x78] sm:$0xf] }
  0x77   : > { %1773 = vrot.lane.b32.xlu1 %v1642_v60, %s3307_s26  ;;  %v1137_v60 = vor.u32 %v1136_v51, %v1132_v49  ;;  %v1646_v8 = vshll.u32 %v2895_v48, 16  ;;  %v1644_v22 = vshrl.u32 %v2895_v48, 16  ;;  %v1862_v49 = vrot.slane %v3161_v3, 1  ;;  %v280_v51 = vld [vmem:[%s3396_s9 + $0x6c] sm:$0xe] }
  0x78   : > { %v1354_v16 = vsel %vm818_vm0, %v1352_v0, %v1353_v5  ;;  %v645_v19 = vshll.u32 %v3732_v6, 16  ;;  %v643_v35 = vshrl.u32 %v3732_v6, 16  ;;  %v1653_v43 = vrot.slane %v1651_v27, 1  ;;  %v2681_v0 = vld [vmem:[%s3396_s9 + $0x6c] sm:$0xf] }
  0x79   : > { %1771 = vrot.lane.b32.xlu0 %v1630_v55, %s3307_s26  ;;  %v1349_v55 = vrot.slane %v2879_v54, 1  ;;  %v1142_v7 = vsel %vm545_vm1, %v1137_v60, %v1141_v59  ;;  %v1648_v26 = vrot.slane %v1646_v8, 1  ;;  %v659_v54 = vrot.slane %v657_v41, 1 }
  0x7a   : > { %v2834_v5 = vcombine.low %v280_v51, %v3737_v11  ;;  %v664_v3 = vrot.slane %v662_v56, 1  ;;  %v1864_v8 = vrot.slane %v2928_v58, 1  ;;  %v3831_v51 = vld [vmem:[%s3396_s9 + $0x7c] sm:$0xf] }
  0x7b   : > { %750 = vrot.lane.b32.xlu1 %v629_v13, %s3304_s15  ;;  %v1660_v13 = vrot.slane %v1658_v63, 1  ;;  %v1649_v42 = vor.u32 %v1648_v26, %v1644_v22  ;;  %v3777_v63 = vld [vmem:[%s3396_s9 + $0x7c] sm:$0xf]  ;;  %v844_v26 = vrot.slane %v3742_v15, 1 }
  0x7d   : > { %1899 = vrot.lane.b32.xlu0 %v1857_v21, %s3308_s30  ;;  %v2783_v21 = vld [vmem:[%s3396_s9 + $0x60] sm:$0xe]  ;;  %v1654_v60 = vsel %vm545_vm1, %v1649_v42, %v1653_v43  ;;  %v2747_v42 = vld [vmem:[%s3396_s9 + $0x84] sm:$0xf]  ;;  %v3823_v43 = vld [vmem:[%s3396_s9 + $0x88] sm:$0xf] }
  0x7e   : > { %v2927_v31 = vcombine.low %v2783_v21, %v2742_v39 }
  0x7f   : > { %752 = vrot.lane.b32.xlu1 %v641_v28, %s3304_s15 }
  0x80   : > { %v1861_v34 = vrot.slane %v2927_v31, 1  ;;  %v3811_v31 = vld [vmem:[%s3396_s9 + $0x74] ss:$0 sps:$4 sm:$0x11]  }
  0x81   : > { %1901 = vrot.lane.b32.xlu0 %v1860_v10, %s3308_s30 }
  0x83   : > { %881 = vrot.lane.b32.xlu1 %v842_v36, %s3303_s12  ;;  %v647_v36 = vrot.slane %v645_v19, 1  ;;  %v846_v19 = vrot.slane %v2834_v5, 1  ;;  %v243_v5 = vld [vmem:[%s3396_s9 + $0x78] sm:$0xf] }
  0x85   : > { %879 = vrot.lane.b32.xlu0 %v839_v47, %s3303_s12  ;;  %v652_v47 = vrot.slane %v650_v33, 1  ;;  %v648_v39 = vor.u32 %v647_v36, %v643_v35  ;;  %v2721_v33 = vld [vmem:[%s3396_s9 + $0x6c] sm:$0xe]  ;;  %v848_v15 = vsel %vm818_vm0, %v846_v19, %v847_v14 }
  0x87   : > { %993 = vrot.lane.b32.xlu1 %v2848_v12, %s3301_s10  ;;  %v1656_v12 = vshrl.u32 %v2896_v45, 16  ;;  %v653_v40 = vsel %vm545_vm1, %v648_v39, %v652_v47 }
  0x89   : > { %991 = vrot.lane.b32.xlu0 %v2847_v25, %s3301_s10  ;;  %v1351_v25 = vsel %vm818_vm0, %v1349_v55, %v1350_v2  ;;  %v1661_v10 = vor.u32 %v1660_v13, %v1656_v12  ;;  %v660_v55 = vor.u32 %v659_v54, %v655_v53 }
  0x8b   : > { %1265 = vrot.lane.b32.xlu1 %v1154_v4, %s3305_s23  ;;  %v1666_v46 = vsel %vm545_vm1, %v1661_v10, %v1665_v17  ;;  %v3781_v4 = vld [vmem:[%s3396_s9 + $0x70] sm:$0xf]  ;;  %v665_v21 = vsel %vm545_vm1, %v660_v55, %v664_v3  ;;  %v2722_v17 = vld [vmem:[%s3396_s9 + $0x78] sm:$0xe] }
  0x8c   : > { %v3796_v13 = vcombine.low %v2681_v0, %v3781_v4  ;;  %v2882_v54 = vcombine.low %v2722_v17, %v3777_v63  ;;  %v2881_v56 = vcombine.low %v2721_v33, %v3781_v4 }
  0x8d   : > { %1263 = vrot.lane.b32.xlu0 %v1142_v7, %s3305_s23  ;;  %v3789_v7 = vcombine.low %v2683_v57, %v3777_v63 }
  0x8e   : > { %v1158_v27 = vshll.u32 %v3796_v13, 16  ;;  %v1156_v41 = vshrl.u32 %v3796_v13, 16  ;;  %v1358_v55 = vrot.slane %v2882_v54, 1  ;;  %v2786_v54 = vld [vmem:[%s3396_s9 + $0x84] sm:$0xe] }
  0x8f   : > { %1393 = vrot.lane.b32.xlu1 %v1354_v16, %s3302_s11  ;;  %v3753_v28 = vpop.permute.xlu1 %981  ;;  %v3800_v16 = vld [vmem:[%s3396_s9 + $0x80] ss:$0 sps:$4 sm:$0x11]   ;;  %v1170_v1 = vshll.u32 %v3789_v7, 16  ;;  %v1168_v35 = vshrl.u32 %v3789_v7, 16 }
  0x90   : > { %v3755_v30 = vpop.permute.xlu0 %979  ;;  %v1175_v36 = vshll.u32 %v3800_v16, 16  ;;  %v1160_v47 = vrot.slane %v1158_v27, 1  ;;  %v1359_v3 = vrot.slane %v3800_v16, 1 }
  0x91   : > { %1391 = vrot.lane.b32.xlu0 %v1351_v25, %s3302_s11  ;;  %v1172_v38 = vrot.slane %v1170_v1, 1 }
  0x92   : > { %v1161_v4 = vor.u32 %v1160_v47, %v1156_v41  ;;  %v1360_v27 = vsel %vm818_vm0, %v1358_v55, %v1359_v3 }
  0x93   : > { %1505 = vrot.lane.b32.xlu1 %v2896_v45, %s3306_s25  ;;  %v279_v45 = vld [vmem:[%s3396_s9 + $0x60] sm:$0xe] }
  0x94   : > { %v3767_v52 = vpop.permute.xlu0 %1379  ;;  %v2833_v12 = vcombine.low %v279_v45, %v3722_v62  ;;  %v1866_v62 = vsel %vm818_vm0, %v1864_v8, %v1865_v9  ;;  %v3839_v45 = vcombine.low %v2747_v42, %v3823_v43  ;;  %v1355_v8 = vrot.slane %v2881_v56, 1 }
  0x95   : > { %1503 = vrot.lane.b32.xlu0 %v2895_v48, %s3306_s25  ;;  %v3772_v59 = vpop.permute.xlu1 %867  ;;  %v1863_v48 = vsel %vm818_vm0, %v1861_v34, %v1862_v49  ;;  %v1163_v34 = vshll.u32 %v3811_v31, 16  ;;  %v2745_v49 = vld [vmem:[%s3396_s9 + $0x78] sm:$0xf]  ;;  %v1356_v9 = vrot.slane %v3811_v31, 1 }
  0x96   : > { %v843_v22 = vrot.slane %v2833_v12, 1  ;;  %v3845_v57 = vcombine.low %v2745_v49, %v3831_v51  ;;  %v1682_v12 = vshll.u32 %v3839_v45, 16 }
  0x97   : > { %1777 = vrot.lane.b32.xlu1 %v1666_v46, %s3307_s26  ;;  %v1357_v31 = vsel %vm818_vm0, %v1355_v8, %v1356_v9 }
  0x98   : > { %v845_v46 = vsel %vm818_vm0, %v843_v22, %v844_v26  ;;  %v245_v22 = vld [vmem:[%s3396_s9 + $0x84] sm:$0xf]  ;;  %v1684_v17 = vrot.slane %v1682_v12, 1  ;;  %v2930_v12 = vcombine.low %v2786_v54, %v3823_v43  ;;  %v3193_v54 = vld [vmem:[%s3396_s9 + $0x98] ss:$0 sps:$4 sm:$0x11]  }
  0x99   : > { %1775 = vrot.lane.b32.xlu0 %v1654_v60, %s3307_s26  ;;  %v3791_v2 = vpop.permute.xlu1 %869  ;;  %v1177_v60 = vrot.slane %v1175_v36, 1  ;;  %v1668_v36 = vshrl.u32 %v3845_v57, 16 }
  0x9b   : > { %v739_v11 = vpop.permute.xlu0 %738  ;;  %754 = vrot.lane.b32.xlu1 %v653_v40, %s3304_s15  ;;  %v3853_v40 = vld [vmem:[%s3396_s9 + $0x7c] sm:$0xf] }
  0x9c   : > { %v1925_v39 = vsel %vm1923_vm3, %v3424_v23, %v739_v11  ;;  %v1173_v23 = vor.u32 %v1172_v38, %v1168_v35  ;;  %v3863_v11 = vld [vmem:[%s3396_s9 + $0x8c] ss:$0 sps:$4 sm:$0x11]   ;;  %v3891_v35 = vld [vmem:[%s3396_s9 + $0x80] ss:$0 sps:$4 sm:$0x11]  }
  0x9d   : > { %1903 = vrot.lane.b32.xlu0 %v1863_v48, %s3308_s30  ;;  %v3805_v25 = vpop.permute.xlu1 %1381  ;;  %v1958_v63 = vsel %vm1956_vm4, %v1925_v39, %v3772_v59  ;;  %v1165_v48 = vrot.slane %v1163_v34, 1  ;;  %v1687_v33 = vshll.u32 %v3863_v11, 16  ;;  %v2785_v39 = vld [vmem:[%s3396_s9 + $0x78] sm:$0xe] }
  0x9e   : > { %v1991_v14 = vsel %vm1989_vm5, %v1958_v63, %v3755_v30  ;;  %v1178_v16 = vsel %vm545_vm1, %v1173_v23, %v1177_v60  ;;  %v3881_v30 = vld [vmem:[%s3396_s9 + $0x88] sm:$0xf]  ;;  %v2929_v55 = vcombine.low %v2785_v39, %v3831_v51 }
  0x9f   : > { %v741_v10 = vpop.permute.xlu0 %740  ;;  %756 = vrot.lane.b32.xlu1 %v665_v21, %s3304_s15  ;;  %v3872_v21 = vld [vmem:[%s3396_s9 + $0x80] ss:$0 sps:$4 sm:$0x11]   ;;  %v3899_v38 = vcombine.low %v245_v22, %v3881_v30 }
  0xa0   : > { %v1927_v58 = vsel %vm1923_vm3, %v3429_v29, %v741_v10  ;;  %v1680_v10 = vshrl.u32 %v3839_v45, 16  ;;  %v1868_v22 = vrot.slane %v3872_v21, 1 }
  0xa1   : > { %1905 = vrot.lane.b32.xlu0 %v1866_v62, %s3308_s30  ;;  %v3825_v44 = vpop.permute.xlu1 %1253  ;;  %v1960_v59 = vsel %vm1956_vm4, %v1927_v58, %v3791_v2  ;;  %v1670_v2 = vshll.u32 %v3845_v57, 16  ;;  %v1166_v62 = vsel %vm545_vm1, %v1161_v4, %v1165_v48  ;;  %v1689_v58 = vrot.slane %v1687_v33, 1  ;;  %v3919_v4 = vld [vmem:[%s3396_s9 + $0x8c] ss:$0 sps:$4 sm:$0x11]  }
  0xa2   : > { %v1685_v56 = vor.u32 %v1684_v17, %v1680_v10  ;;  %v681_v48 = vshll.u32 %v3899_v38, 16  ;;  %v686_v43 = vshll.u32 %v3919_v4, 16  ;;  %v3952_v10 = vld [vmem:[%s3396_s9 + $0x88] sm:$0xf]  ;;  %v1870_v17 = vrot.slane %v2930_v12, 1 }
  0xa3   : > { %v1252_v53 = vpop.permute.xlu0 %1251  ;;  %885 = vrot.lane.b32.xlu1 %v848_v15, %s3303_s12  ;;  %v1672_v47 = vrot.slane %v1670_v2, 1 }
  0xa4   : > { %v2024_v19 = vsel %vm2022_vm6, %v1991_v14, %v1252_v53  ;;  %v683_v2 = vrot.slane %v681_v48, 1  ;;  %v2724_v48 = vld [vmem:[%s3396_s9 + $0x90] sm:$0xe] }
  0xa5   : > { %883 = vrot.lane.b32.xlu0 %v845_v46, %s3303_s12  ;;  %v3849_v0 = vpop.permute.xlu1 %1493 }
  0xa7   : > { %v1492_v29 = vpop.permute.xlu0 %1491  ;;  %997 = vrot.lane.b32.xlu1 %v3789_v7, %s3301_s10  ;;  %v3875_v7 = vcombine.low %v243_v5, %v3853_v40 }
  0xa9   : > { %995 = vrot.lane.b32.xlu0 %v3796_v13, %s3301_s10  ;;  %v1766_v1 = vpop.permute.xlu1 %1765  ;;  %v1993_v13 = vsel %vm1989_vm5, %v1960_v59, %v3753_v28  ;;  %v2057_v28 = vsel %vm2055_vm7, %v2024_v19, %v3767_v52  ;;  %v669_v15 = vshll.u32 %v3875_v7, 16  ;;  %v1675_v52 = vshll.u32 %v3872_v21, 16  ;;  %v282_v19 = vld [vmem:[%s3396_s9 + $0x84] sm:$0xe] }
  0xaa   : > { %v2026_v41 = vsel %vm2022_vm6, %v1993_v13, %v3825_v44  ;;  %v2090_v42 = vsel %vm2088_vm8, %v2057_v28, %v1492_v29  ;;  %v674_v44 = vshll.u32 %v3891_v35, 16  ;;  %v667_v60 = vshrl.u32 %v3875_v7, 16  ;;  %v2687_v13 = vld [vmem:[%s3396_s9 + $0x90] sm:$0xf] }
  0xab   : > { %v1764_v26 = vpop.permute.xlu0 %1763  ;;  %1269 = vrot.lane.b32.xlu1 %v1178_v16, %s3305_s23  ;;  %v2059_v23 = vsel %vm2055_vm7, %v2026_v41, %v3805_v25  ;;  %v671_v63 = vrot.slane %v669_v15, 1  ;;  %v1673_v25 = vor.u32 %v1672_v47, %v1668_v36  ;;  %v1677_v3 = vrot.slane %v1675_v52, 1 }
  0xac   : > { %v2123_v34 = vsel %vm2121_vm9, %v2090_v42, %v1764_v26  ;;  %v2092_v5 = vsel %vm2088_vm8, %v2059_v23, %v3849_v0  ;;  %v1690_v0 = vsel %vm545_vm1, %v1685_v56, %v1689_v58  ;;  %v676_v14 = vrot.slane %v674_v44, 1  ;;  %v3945_v26 = vld [vmem:[%s3396_s9 + $0x94] sm:$0xf] }
  0xad   : > { %1267 = vrot.lane.b32.xlu0 %v1166_v62, %s3305_s23  ;;  %v3904_v46 = vpop.permute.xlu1 %742  ;;  %v2125_v59 = vsel %vm2121_vm9, %v2092_v5, %v1766_v1  ;;  %v672_v51 = vor.u32 %v671_v63, %v667_v60  ;;  %v679_v16 = vshrl.u32 %v3899_v38, 16  ;;  %v1867_v62 = vrot.slane %v2929_v55, 1  ;;  %v3194_v60 = vld [vmem:[%s3396_s9 + $0x8c] ss:$0 sps:$4 sm:$0x11]  }
  0xae   : > { %v2836_v33 = vcombine.low %v282_v19, %v3881_v30  ;;  %v688_v36 = vrot.slane %v686_v43, 1  ;;  %v2852_v15 = vcombine.low %v2687_v13, %v3945_v26  ;;  %v1871_v47 = vrot.slane %v3863_v11, 1  ;;  %v2751_v5 = vld [vmem:[%s3396_s9 + $0x9c] sm:$0xf]  ;;  %v3981_v55 = vld [vmem:[%s3396_s9 + $0xa0] sm:$0xf] }
  0xaf   : > { %v1892_v49 = vpop.permute.xlu0 %1891  ;;  %1397 = vrot.lane.b32.xlu1 %v1360_v27, %s3302_s11  ;;  %v281_v27 = vld [vmem:[%s3396_s9 + $0x78] sm:$0xe]  ;;  %v677_v28 = vsel %vm545_vm1, %v672_v51, %v676_v14  ;;  %v684_v21 = vor.u32 %v683_v2, %v679_v16  ;;  %v1869_v42 = vsel %vm818_vm0, %v1867_v62, %v1868_v22  ;;  %v850_v44 = vrot.slane %v3891_v35, 1  ;;  %v2749_v43 = vld [vmem:[%s3396_s9 + $0x90] sm:$0xf] }
  0xb0   : > { %v2156_v53 = vsel %vm2154_vm10, %v2123_v34, %v1892_v49  ;;  %v2835_v52 = vcombine.low %v281_v27, %v3853_v40  ;;  %v852_v39 = vrot.slane %v2836_v33, 1  ;;  %v1194_v11 = vshll.u32 %v2852_v15, 16  ;;  %v3995_v19 = vld [vmem:[%s3396_s9 + $0x94] sm:$0xf] }
  0xb1   : > { %1395 = vrot.lane.b32.xlu0 %v1357_v31, %s3302_s11  ;;  %2989 = vmatprep.mubr.msk.bf16.mxu0 %vm2214_vm11, %v2156_v53  ;;  %v3924_v29 = vpop.permute.xlu1 %744  ;;  %v2685_v31 = vld [vmem:[%s3396_s9 + $0x84] sm:$0xf]  ;;  %v689_v49 = vsel %vm545_vm1, %v684_v21, %v688_v36  ;;  %v853_v53 = vrot.slane %v3919_v4, 1  ;;  %v1872_v56 = vsel %vm818_vm0, %v1870_v17, %v1871_v47  ;;  %v1187_v14 = vshll.u32 %v3194_v60, 16  ;;  %v247_v17 = vld [vmem:[%s3396_s9 + $0x90] sm:$0xf] }
  0xb2   : > { %v2851_v30 = vcombine.low %v2685_v31, %v3952_v10  ;;  %v849_v58 = vrot.slane %v2835_v52, 1  ;;  %v2884_v16 = vcombine.low %v2724_v48, %v3945_v26  ;;  %v3991_v2 = vcombine.low %v2751_v5, %v3981_v55  ;;  %v4007_v33 = vld [vmem:[%s3396_s9 + $0x94] sm:$0xf]  ;;  %v4012_v52 = vld [vmem:[%s3396_s9 + $0xa4] ss:$0 sps:$4 sm:$0x11]  }
  0xb3   : > { %v1894_v8 = vpop.permute.xlu0 %1893  ;;  %1509 = vrot.lane.b32.xlu1 %v3839_v45, %s3306_s25  ;;  %v1678_v45 = vsel %vm545_vm1, %v1673_v25, %v1677_v3  ;;  %v854_v4 = vsel %vm818_vm0, %v852_v39, %v853_v53  ;;  %v2723_v25 = vld [vmem:[%s3396_s9 + $0x84] sm:$0xe]  ;;  %v1192_v3 = vshrl.u32 %v2852_v15, 16  ;;  %v1189_v26 = vrot.slane %v1187_v14, 1 }
  0xb4   : > { %v2158_v9 = vsel %vm2154_vm10, %v2125_v59, %v1894_v8  ;;  %v1182_v23 = vshll.u32 %v2851_v30, 16  ;;  %v1196_v59 = vrot.slane %v1194_v11, 1  ;;  %v1199_v8 = vshll.u32 %v3193_v54, 16  ;;  %v4020_v53 = vld [vmem:[%s3396_s9 + $0x98] ss:$0 sps:$4 sm:$0x11]  }
  0xb5   : > { %1507 = vrot.lane.b32.xlu0 %v3845_v57, %s3306_s25  ;;  %2990 = vmatmul.mubr.msk.bf16.vlgmr.msra.gmra.mrb[0].mxu0 %vm2214_vm11, %v2158_v9  ;;  %v3939_v1 = vpop.permute.xlu1 %873  ;;  %v851_v9 = vsel %vm818_vm0, %v849_v58, %v850_v44  ;;  %v1180_v12 = vshrl.u32 %v2851_v30, 16  ;;  %v4003_v31 = vcombine.low %v2749_v43, %v3995_v19  ;;  %v1364_v21 = vrot.slane %v2884_v16, 1  ;;  %v249_v44 = vld [vmem:[%s3396_s9 + $0x9c] sm:$0xf]  ;;  %v2787_v43 = vld [vmem:[%s3396_s9 + $0x90] sm:$0xe] }
  0xb6   : > { %v1197_v62 = vor.u32 %v1196_v59, %v1192_v3  ;;  %v1201_v22 = vrot.slane %v1199_v8, 1  ;;  %v1706_v36 = vshll.u32 %v3991_v2, 16  ;;  %v1362_v47 = vrot.slane %v3194_v60, 1  ;;  %v4043_v3 = vld [vmem:[%s3396_s9 + $0x98] ss:$0 sps:$4 sm:$0x11]  }
  0xb7   : > { %v3947_v57 = vpop.permute.xlu0 %871  ;;  %1781 = vrot.lane.b32.xlu1 %v1690_v0, %s3307_s26  ;;  %v1184_v0 = vrot.slane %v1182_v23, 1  ;;  %v4023_v11 = vcombine.low %v247_v17, %v4007_v33  ;;  %v1694_v58 = vshll.u32 %v4003_v31, 16  ;;  %v1704_v60 = vshrl.u32 %v3991_v2, 16 }
  0xb8   : > { %v1202_v39 = vsel %vm545_vm1, %v1197_v62, %v1201_v22  ;;  %v1708_v48 = vrot.slane %v1706_v36, 1  ;;  %v1699_v16 = vshll.u32 %v4020_v53, 16  ;;  %v2931_v36 = vcombine.low %v2787_v43, %v3995_v19 }
  0xb9   : > { %1779 = vrot.lane.b32.xlu0 %v1678_v45, %s3307_s26  ;;  %v3959_v41 = vpop.permute.xlu1 %985  ;;  %v2883_v45 = vcombine.low %v2723_v25, %v3952_v10  ;;  %v1185_v27 = vor.u32 %v1184_v0, %v1180_v12  ;;  %v1365_v10 = vrot.slane %v3193_v54, 1  ;;  %v1692_v25 = vshrl.u32 %v4003_v31, 16 }
  0xba   : > { %v1696_v14 = vrot.slane %v1694_v58, 1  ;;  %v284_v58 = vld [vmem:[%s3396_s9 + $0x9c] sm:$0xe]  ;;  %v856_v43 = vrot.slane %v4043_v3, 1 }
  0xbb   : > { %v3965_v34 = vpop.permute.xlu0 %983  ;;  %758 = vrot.lane.b32.xlu1 %v677_v28, %s3304_s15  ;;  %v1366_v23 = vsel %vm818_vm0, %v1364_v21, %v1365_v10 }
  0xbd   : > { %1907 = vrot.lane.b32.xlu0 %v1869_v42, %s3308_s30  ;;  %v3972_v40 = vpop.permute.xlu1 %1257  ;;  %v1361_v42 = vrot.slane %v2883_v45, 1  ;;  %v1709_v45 = vor.u32 %v1708_v48, %v1704_v60  ;;  %v1873_v48 = vrot.slane %v2931_v36, 1 }
  0xbf   : > { %v1256_v63 = vpop.permute.xlu0 %1255  ;;  %760 = vrot.lane.b32.xlu1 %v689_v49, %s3304_s15  ;;  %v1929_v49 = vsel %vm1923_vm3, %v3480_v18, %v3904_v46  ;;  %v4031_v18 = vld [vmem:[%s3396_s9 + $0xa0] sm:$0xf]  ;;  %v1363_v5 = vsel %vm818_vm0, %v1361_v42, %v1362_v47  ;;  %v1701_v42 = vrot.slane %v1699_v16, 1 }
  0xc0   : > { %v4052_v8 = vcombine.low %v249_v44, %v4031_v18 }
  0xc1   : > { %1909 = vrot.lane.b32.xlu0 %v1872_v56, %s3308_s30  ;;  %v3986_v35 = vpop.permute.xlu1 %1385  ;;  %v1190_v56 = vsel %vm545_vm1, %v1185_v27, %v1189_v26  ;;  %v698_v27 = vshll.u32 %v4043_v3, 16 }
  0xc3   : > { %v1384_v51 = vpop.permute.xlu0 %1383  ;;  %889 = vrot.lane.b32.xlu1 %v854_v4, %s3303_s12  ;;  %v1711_v4 = vshll.u32 %v4012_v52, 16 }
  0xc5   : > { %887 = vrot.lane.b32.xlu0 %v851_v9, %s3303_s12  ;;  %v4000_v13 = vpop.permute.xlu1 %1497  ;;  %v1713_v22 = vrot.slane %v1711_v4, 1 }
  0xc7   : > { %v1496_v28 = vpop.permute.xlu0 %1495  ;;  %1001 = vrot.lane.b32.xlu1 %v2852_v15, %s3301_s10  ;;  %v1962_v15 = vsel %vm1956_vm4, %v1929_v49, %v3947_v57 }
  0xc8   : > { %v1995_v46 = vsel %vm1989_vm5, %v1962_v15, %v3965_v34  ;;  %v1931_v34 = vsel %vm1923_vm3, %v3493_v32, %v3924_v29 }
  0xc9   : > { %999 = vrot.lane.b32.xlu0 %v2851_v30, %s3301_s10  ;;  %v1770_v54 = vpop.permute.xlu1 %1769  ;;  %v2028_v57 = vsel %vm2022_vm6, %v1995_v46, %v1256_v63  ;;  %v693_v63 = vshll.u32 %v4023_v11, 16  ;;  %v1964_v9 = vsel %vm1956_vm4, %v1931_v34, %v3939_v1  ;;  %v4107_v34 = vld [vmem:[%s3396_s9 + $0xa0] sm:$0xf] }
  0xca   : > { %v2061_v59 = vsel %vm2055_vm7, %v2028_v57, %v1384_v51  ;;  %v1997_v32 = vsel %vm1989_vm5, %v1964_v9, %v3959_v41  ;;  %v691_v41 = vshrl.u32 %v4023_v11, 16  ;;  %v1874_v57 = vrot.slane %v4020_v53, 1 }
  0xcb   : > { %v1768_v30 = vpop.permute.xlu0 %1767  ;;  %1273 = vrot.lane.b32.xlu1 %v1202_v39, %s3305_s23  ;;  %v2094_v12 = vsel %vm2088_vm8, %v2061_v59, %v1496_v28  ;;  %v2030_v62 = vsel %vm2022_vm6, %v1997_v32, %v3972_v40  ;;  %v695_v17 = vrot.slane %v693_v63, 1  ;;  %v4075_v40 = vld [vmem:[%s3396_s9 + $0xa4] ss:$0 sps:$4 sm:$0x11]   ;;  %v705_v28 = vshll.u32 %v4052_v8, 16 }
  0xcc   : > { %v2127_v29 = vsel %vm2121_vm9, %v2094_v12, %v1768_v30  ;;  %v2063_v26 = vsel %vm2055_vm7, %v2030_v62, %v3986_v35  ;;  %v1697_v35 = vor.u32 %v1696_v14, %v1692_v25  ;;  %v2788_v39 = vld [vmem:[%s3396_s9 + $0x9c] sm:$0xe]  ;;  %v710_v46 = vshll.u32 %v4075_v40, 16 }
  0xcd   : > { %1271 = vrot.lane.b32.xlu0 %v1190_v56, %s3305_s23  ;;  %v4057_v0 = vpop.permute.xlu1 %746  ;;  %v2096_v21 = vsel %vm2088_vm8, %v2063_v26, %v4000_v13  ;;  %v1714_v56 = vsel %vm545_vm1, %v1709_v45, %v1713_v22  ;;  %v700_v13 = vrot.slane %v698_v27, 1  ;;  %v696_v19 = vor.u32 %v695_v17, %v691_v41  ;;  %v2689_v25 = vld [vmem:[%s3396_s9 + $0x9c] sm:$0xf]  ;;  %v3209_v22 = vld [vmem:[%s3396_s9 + $0xb0] ss:$0 sps:$4 sm:$0x11]  }
  0xce   : > { %v2129_v47 = vsel %vm2121_vm9, %v2096_v21, %v1770_v54  ;;  %v703_v54 = vshrl.u32 %v4052_v8, 16  ;;  %v707_v44 = vrot.slane %v705_v28, 1  ;;  %v2932_v30 = vcombine.low %v2788_v39, %v3981_v55  ;;  %v3210_v41 = vld [vmem:[%s3396_s9 + $0xa4] ss:$0 sps:$4 sm:$0x11]  }
  0xcf   : > { %v1896_v51 = vpop.permute.xlu0 %1895  ;;  %1401 = vrot.lane.b32.xlu1 %v1366_v23, %s3302_s11  ;;  %v1702_v60 = vsel %vm545_vm1, %v1697_v35, %v1701_v42  ;;  %v2838_v59 = vcombine.low %v284_v58, %v4031_v18  ;;  %v701_v63 = vsel %vm545_vm1, %v696_v19, %v700_v13  ;;  %v712_v53 = vrot.slane %v710_v46, 1  ;;  %v2725_v21 = vld [vmem:[%s3396_s9 + $0x9c] sm:$0xe]  ;;  %v4138_v39 = vld [vmem:[%s3396_s9 + $0xb8] sm:$0xf] }
  0xd0   : > { %v2160_v1 = vsel %vm2154_vm10, %v2127_v29, %v1896_v51  ;;  %v708_v9 = vor.u32 %v707_v44, %v703_v54  ;;  %v1875_v16 = vsel %vm818_vm0, %v1873_v48, %v1874_v57  ;;  %v1876_v32 = vrot.slane %v2932_v30, 1  ;;  %v2753_v46 = vld [vmem:[%s3396_s9 + $0xa8] sm:$0xf] }
  0xd1   : > { %1399 = vrot.lane.b32.xlu0 %v1363_v5, %s3302_s11  ;;  %2993 = vmatprep.mubr.msk.bf16.mxu0 %vm2214_vm11, %v2160_v1  ;;  %v4080_v10 = vpop.permute.xlu1 %748  ;;  %v2692_v5 = vld [vmem:[%s3396_s9 + $0xac] sm:$0xf]  ;;  %v1877_v29 = vrot.slane %v4012_v52, 1  ;;  %v2853_v18 = vcombine.low %v2689_v25, %v4107_v34  ;;  %v859_v51 = vrot.slane %v4075_v40, 1  ;;  %v858_v62 = vrot.slane %v2838_v59, 1 }
  0xd2   : > { %v713_v45 = vsel %vm545_vm1, %v708_v9, %v712_v53  ;;  %v2726_v40 = vld [vmem:[%s3396_s9 + $0xa8] sm:$0xe]  ;;  %v1223_v42 = vshll.u32 %v3209_v22, 16  ;;  %v1211_v19 = vshll.u32 %v3210_v41, 16  ;;  %v2885_v44 = vcombine.low %v2725_v21, %v4107_v34 }
  0xd3   : > { %v1898_v49 = vpop.permute.xlu0 %1897  ;;  %1513 = vrot.lane.b32.xlu1 %v3991_v2, %s3306_s25  ;;  %v283_v2 = vld [vmem:[%s3396_s9 + $0x90] sm:$0xe]  ;;  %v1878_v26 = vsel %vm818_vm0, %v1876_v32, %v1877_v29  ;;  %v1206_v17 = vshll.u32 %v2853_v18, 16  ;;  %v860_v36 = vsel %vm818_vm0, %v858_v62, %v859_v51  ;;  %v1204_v13 = vshrl.u32 %v2853_v18, 16  ;;  %v251_v59 = vld [vmem:[%s3396_s9 + $0xa8] sm:$0xf] }
  0xd4   : > { %v2162_v15 = vsel %vm2154_vm10, %v2129_v47, %v1898_v49  ;;  %v2837_v55 = vcombine.low %v283_v2, %v4007_v33  ;;  %v2886_v47 = vcombine.low %v2726_v40, %v2692_v5  ;;  %v2755_v49 = vld [vmem:[%s3396_s9 + $0xb4] sm:$0xf]  ;;  %v4146_v2 = vld [vmem:[%s3396_s9 + $0xac] sm:$0xf]  ;;  %v1225_v48 = vrot.slane %v1223_v42, 1 }
  0xd5   : > { %1511 = vrot.lane.b32.xlu0 %v4003_v31, %s3306_s25  ;;  %2994 = vmatmul.mubr.msk.bf16.gmra.mrb[4].mxu0 %vm2214_vm11, %v2162_v15  ;;  %v4097_v23 = vpop.permute.xlu1 %877  ;;  %v2691_v31 = vld [vmem:[%s3396_s9 + $0xa8] sm:$0xf]  ;;  %v1208_v58 = vrot.slane %v1206_v17, 1  ;;  %v4150_v30 = vcombine.low %v2755_v49, %v4138_v39  ;;  %v4156_v34 = vcombine.low %v2753_v46, %v4146_v2  ;;  %v1371_v9 = vrot.slane %v3209_v22, 1 }
  0xd6   : > { %v2854_v12 = vcombine.low %v2691_v31, %v2692_v5  ;;  %v855_v1 = vrot.slane %v2837_v55, 1  ;;  %v1213_v5 = vrot.slane %v1211_v19, 1  ;;  %v1370_v25 = vrot.slane %v2886_v47, 1  ;;  %v4160_v55 = vld [vmem:[%s3396_s9 + $0xac] sm:$0xf] }
  0xd7   : > { %v4103_v4 = vpop.permute.xlu0 %875  ;;  %1785 = vrot.lane.b32.xlu1 %v1714_v56, %s3307_s26  ;;  %v1209_v31 = vor.u32 %v1208_v58, %v1204_v13  ;;  %v1367_v53 = vrot.slane %v2885_v44, 1  ;;  %v4163_v32 = vld [vmem:[%s3396_s9 + $0xbc] ss:$0 sps:$4 sm:$0x11]   ;;  %v1730_v29 = vshll.u32 %v4150_v30, 16  ;;  %v1933_v51 = vsel %vm1923_vm3, %v3557_v50, %v4057_v0 }
  0xd8   : > { %v1218_v52 = vshll.u32 %v2854_v12, 16  ;;  %v1216_v3 = vshrl.u32 %v2854_v12, 16  ;;  %v857_v56 = vsel %vm818_vm0, %v855_v1, %v856_v43  ;;  %v4176_v62 = vcombine.low %v251_v59, %v4160_v55  ;;  %v4184_v50 = vld [vmem:[%s3396_s9 + $0xb8] sm:$0xf]  ;;  %v2789_v46 = vld [vmem:[%s3396_s9 + $0xa8] sm:$0xe] }
  0xd9   : > { %1783 = vrot.lane.b32.xlu0 %v1702_v60, %s3307_s26  ;;  %v4114_v14 = vpop.permute.xlu1 %989  ;;  %v1966_v1 = vsel %vm1956_vm4, %v1933_v51, %v4103_v4  ;;  %v1214_v22 = vsel %vm545_vm1, %v1209_v31, %v1213_v5  ;;  %v1735_v40 = vshll.u32 %v4163_v32, 16  ;;  %v1732_v21 = vrot.slane %v1730_v29, 1  ;;  %v4228_v59 = vld [vmem:[%s3396_s9 + $0xbc] ss:$0 sps:$4 sm:$0x11]  }
  0xda   : > { %v1220_v35 = vrot.slane %v1218_v52, 1  ;;  %v1718_v52 = vshll.u32 %v4156_v34, 16 }
  0xdb   : > { %v4119_v33 = vpop.permute.xlu0 %987  ;;  %762 = vrot.lane.b32.xlu1 %v701_v63, %s3304_s15  ;;  %v1737_v44 = vrot.slane %v1735_v40, 1  ;;  %v2695_v40 = vld [vmem:[%s3396_s9 + $0xc0] sm:$0xf] }
  0xdc   : > { %v1221_v60 = vor.u32 %v1220_v35, %v1216_v3  ;;  %v1999_v0 = vsel %vm1989_vm5, %v1966_v1, %v4119_v33  ;;  %v1728_v3 = vshrl.u32 %v4150_v30, 16  ;;  %v4196_v35 = vld [vmem:[%s3396_s9 + $0xb0] ss:$0 sps:$4 sm:$0x11]   ;;  %v1935_v33 = vsel %vm1923_vm3, %v3571_v61, %v4080_v10 }
  0xdd   : > { %1911 = vrot.lane.b32.xlu0 %v1875_v16, %s3308_s30  ;;  %v4127_v27 = vpop.permute.xlu1 %1261  ;;  %v1368_v16 = vrot.slane %v3210_v41, 1  ;;  %v1372_v41 = vsel %vm818_vm0, %v1370_v25, %v1371_v9  ;;  %v1968_v49 = vsel %vm1956_vm4, %v1935_v33, %v4097_v23  ;;  %v1720_v58 = vrot.slane %v1718_v52, 1  ;;  %v4262_v33 = vld [vmem:[%s3396_s9 + $0xb8] sm:$0xf] }
  0xde   : > { %v1226_v43 = vsel %vm545_vm1, %v1221_v60, %v1225_v48  ;;  %v2001_v61 = vsel %vm1989_vm5, %v1968_v49, %v4114_v14  ;;  %v1733_v48 = vor.u32 %v1732_v21, %v1728_v3  ;;  %v722_v31 = vshll.u32 %v4196_v35, 16  ;;  %v285_v21 = vld [vmem:[%s3396_s9 + $0xa8] sm:$0xe] }
  0xdf   : > { %v1260_v28 = vpop.permute.xlu0 %1259  ;;  %764 = vrot.lane.b32.xlu1 %v713_v45, %s3304_s15  ;;  %v4173_v45 = vld [vmem:[%s3396_s9 + $0xb0] ss:$0 sps:$4 sm:$0x11]   ;;  %v1369_v17 = vsel %vm818_vm0, %v1367_v53, %v1368_v16  ;;  %v2034_v60 = vsel %vm2022_vm6, %v2001_v61, %v4127_v27  ;;  %v715_v14 = vshrl.u32 %v4176_v62, 16 }
  0xe0   : > { %v2032_v4 = vsel %vm2022_vm6, %v1999_v0, %v1260_v28  ;;  %v717_v28 = vshll.u32 %v4176_v62, 16  ;;  %v1723_v19 = vshll.u32 %v4173_v45, 16  ;;  %v286_v0 = vld [vmem:[%s3396_s9 + $0xb4] sm:$0xe] }
  0xe1   : > { %1913 = vrot.lane.b32.xlu0 %v1878_v26, %s3308_s30  ;;  %v4140_v15 = vpop.permute.xlu1 %1389  ;;  %v253_v26 = vld [vmem:[%s3396_s9 + $0xb4] sm:$0xf] }
  0xe2   : > { %v4205_v47 = vcombine.low %v253_v26, %v4184_v50  ;;  %v2067_v5 = vsel %vm2055_vm7, %v2034_v60, %v4140_v15  ;;  %v719_v25 = vrot.slane %v717_v28, 1  ;;  %v1725_v16 = vrot.slane %v1723_v19, 1  ;;  %v3227_v60 = vld [vmem:[%s3396_s9 + $0xc8] ss:$0 sps:$4 sm:$0x11]  }
  0xe3   : > { %v1388_v54 = vpop.permute.xlu0 %1387  ;;  %893 = vrot.lane.b32.xlu1 %v860_v36, %s3303_s12  ;;  %v1716_v36 = vshrl.u32 %v4156_v34, 16  ;;  %v2933_v15 = vcombine.low %v2789_v46, %v4146_v2  ;;  %v734_v26 = vshll.u32 %v4228_v59, 16  ;;  %v2840_v28 = vcombine.low %v286_v0, %v4184_v50 }
  0xe4   : > { %v2065_v42 = vsel %vm2055_vm7, %v2032_v4, %v1388_v54  ;;  %v729_v27 = vshll.u32 %v4205_v47, 16  ;;  %v720_v2 = vor.u32 %v719_v25, %v715_v14  ;;  %v4255_v4 = vld [vmem:[%s3396_s9 + $0xc4] sm:$0xf]  ;;  %v865_v46 = vrot.slane %v4228_v59, 1  ;;  %v2727_v59 = vld [vmem:[%s3396_s9 + $0xb4] sm:$0xe] }
  0xe5   : > { %891 = vrot.lane.b32.xlu0 %v857_v56, %s3303_s12  ;;  %v4153_v57 = vpop.permute.xlu1 %1501  ;;  %v1721_v53 = vor.u32 %v1720_v58, %v1716_v36  ;;  %v2693_v36 = vld [vmem:[%s3396_s9 + $0xb4] sm:$0xf]  ;;  %v736_v49 = vrot.slane %v734_v26, 1  ;;  %v3228_v14 = vld [vmem:[%s3396_s9 + $0xbc] ss:$0 sps:$4 sm:$0x11]  }
  0xe6   : > { %v731_v52 = vrot.slane %v729_v27, 1  ;;  %v4299_v26 = vld [vmem:[%s3396_s9 + $0xc4] sm:$0xf] }
  0xe7   : > { %v1500_v63 = vpop.permute.xlu0 %1499  ;;  %1005 = vrot.lane.b32.xlu1 %v2854_v12, %s3301_s10 }
  0xe8   : > { %v2098_v56 = vsel %vm2088_vm8, %v2065_v42, %v1500_v63  ;;  %v2100_v63 = vsel %vm2088_vm8, %v2067_v5, %v4153_v57  ;;  %v1738_v57 = vsel %vm545_vm1, %v1733_v48, %v1737_v44  ;;  %v1883_v42 = vrot.slane %v4163_v32, 1 }
  0xe9   : > { %1003 = vrot.lane.b32.xlu0 %v2853_v18, %s3301_s10  ;;  %v1774_v12 = vpop.permute.xlu1 %1773  ;;  %v2855_v32 = vcombine.low %v2693_v36, %v4262_v33  ;;  %v864_v44 = vrot.slane %v2840_v28, 1  ;;  %v862_v5 = vrot.slane %v4196_v35, 1 }
  0xea   : > { %v2133_v29 = vsel %vm2121_vm9, %v2100_v63, %v1774_v12  ;;  %v727_v12 = vshrl.u32 %v4205_v47, 16  ;;  %v2728_v63 = vld [vmem:[%s3396_s9 + $0xc0] sm:$0xe] }
  0xeb   : > { %v1772_v18 = vpop.permute.xlu0 %1771  ;;  %1277 = vrot.lane.b32.xlu1 %v1226_v43, %s3305_s23  ;;  %v2790_v43 = vld [vmem:[%s3396_s9 + $0xb4] sm:$0xe]  ;;  %v1230_v25 = vshll.u32 %v2855_v32, 16  ;;  %v2888_v0 = vcombine.low %v2728_v63, %v4255_v4 }
  0xec   : > { %v2131_v10 = vsel %vm2121_vm9, %v2098_v56, %v1772_v18  ;;  %v1726_v18 = vsel %vm545_vm1, %v1721_v53, %v1725_v16  ;;  %v2856_v56 = vcombine.low %v2695_v40, %v4255_v4  ;;  %v866_v53 = vsel %vm818_vm0, %v864_v44, %v865_v46 }
  0xed   : > { %1275 = vrot.lane.b32.xlu0 %v1214_v22, %s3305_s23  ;;  %v4210_v13 = vpop.permute.xlu1 %750  ;;  %v724_v22 = vrot.slane %v722_v31, 1  ;;  %v1376_v4 = vrot.slane %v2888_v0, 1 }
  0xee   : > { %v1240_v16 = vshrl.u32 %v2856_v56, 16 }
  0xef   : > { %v1900_v54 = vpop.permute.xlu0 %1899  ;;  %1405 = vrot.lane.b32.xlu1 %v1372_v41, %s3302_s11  ;;  %v1879_v41 = vrot.slane %v2933_v15, 1 }
  0xf0   : > { %v2164_v23 = vsel %vm2154_vm10, %v2131_v10, %v1900_v54  ;;  %v2839_v10 = vcombine.low %v285_v21, %v4160_v55 }
  0xf1   : > { %1403 = vrot.lane.b32.xlu0 %v1369_v17, %s3302_s11  ;;  %2997 = vmatprep.mubr.msk.bf16.mxu0 %vm2214_vm11, %v2164_v23  ;;  %v4233_v9 = vpop.permute.xlu1 %752  ;;  %v1880_v17 = vrot.slane %v4173_v45, 1  ;;  %v732_v45 = vor.u32 %v731_v52, %v727_v12  ;;  %v1242_v23 = vshll.u32 %v2856_v56, 16  ;;  %v2757_v52 = vld [vmem:[%s3396_s9 + $0xc0] sm:$0xf] }
  0xf2   : > { %v861_v31 = vrot.slane %v2839_v10, 1 }
  0xf3   : > { %v1902_v51 = vpop.permute.xlu0 %1901  ;;  %1517 = vrot.lane.b32.xlu1 %v4150_v30, %s3306_s25  ;;  %v1881_v19 = vsel %vm818_vm0, %v1879_v41, %v1880_v17  ;;  %v737_v54 = vsel %vm545_vm1, %v732_v45, %v736_v49  ;;  %v1244_v15 = vrot.slane %v1242_v23, 1  ;;  %v1377_v45 = vrot.slane %v3227_v60, 1 }
  0xf4   : > { %v2166_v1 = vsel %vm2154_vm10, %v2133_v29, %v1902_v51  ;;  %v1247_v29 = vshll.u32 %v3227_v60, 16  ;;  %v2759_v51 = vld [vmem:[%s3396_s9 + $0xcc] sm:$0xf]  ;;  %v863_v35 = vsel %vm818_vm0, %v861_v31, %v862_v5  ;;  %v1374_v49 = vrot.slane %v3228_v14, 1 }
  0xf5   : > { %1515 = vrot.lane.b32.xlu0 %v4156_v34, %s3306_s25  ;;  %2998 = vmatmul.mubr.msk.bf16.gmra.mrb[8].mxu0 %vm2214_vm11, %v2166_v1  ;;  %v4248_v30 = vpop.permute.xlu1 %881  ;;  %v2934_v34 = vcombine.low %v2790_v43, %v4138_v39  ;;  %v725_v39 = vsel %vm545_vm1, %v720_v2, %v724_v22  ;;  %v1228_v1 = vshrl.u32 %v2855_v32, 16  ;;  %v1235_v22 = vshll.u32 %v3228_v14, 16  ;;  %v4295_v2 = vld [vmem:[%s3396_s9 + $0xd0] sm:$0xf] }
  0xf6   : > { %v1245_v41 = vor.u32 %v1244_v15, %v1240_v16  ;;  %v1249_v17 = vrot.slane %v1247_v29, 1  ;;  %v1939_v5 = vsel %vm1923_vm3, %v3654_v37, %v4233_v9  ;;  %v2792_v15 = vld [vmem:[%s3396_s9 + $0xcc] sm:$0xe] }
  0xf7   : > { %v4257_v3 = vpop.permute.xlu0 %879  ;;  %1789 = vrot.lane.b32.xlu1 %v1738_v57, %s3307_s26  ;;  %v1882_v61 = vrot.slane %v2934_v34, 1  ;;  %v1232_v57 = vrot.slane %v1230_v25, 1  ;;  %v2904_v34 = vcombine.low %v2759_v51, %v4295_v2  ;;  %v1237_v36 = vrot.slane %v1235_v22, 1  ;;  %v2791_v51 = vld [vmem:[%s3396_s9 + $0xc0] sm:$0xe] }
  0xf8   : > { %v2936_v22 = vcombine.low %v2792_v15, %v4295_v2 }
  0xf9   : > { %1787 = vrot.lane.b32.xlu0 %v1726_v18, %s3307_s26  ;;  %v4270_v58 = vpop.permute.xlu1 %993  ;;  %v1884_v55 = vsel %vm818_vm0, %v1882_v61, %v1883_v42  ;;  %v2887_v18 = vcombine.low %v2727_v59, %v4262_v33  ;;  %v1233_v21 = vor.u32 %v1232_v57, %v1228_v1  ;;  %v2903_v42 = vcombine.low %v2757_v52, %v4299_v26 }
  0xfa   : > { %v1250_v61 = vsel %vm545_vm1, %v1245_v41, %v1249_v17  ;;  %v1754_v10 = vshll.u32 %v2904_v34, 16  ;;  %v1752_v31 = vshrl.u32 %v2904_v34, 16 }
  0xfb   : > { %v992_v50 = vpop.permute.xlu0 %991  ;;  %766 = vrot.lane.b32.xlu1 %v725_v39, %s3304_s15  ;;  %v4308_v39 = vld [vmem:[%s3396_s9 + $0xd4] ss:$0 sps:$4 sm:$0x11]   ;;  %v1373_v33 = vrot.slane %v2887_v18, 1  ;;  %v1238_v46 = vsel %vm545_vm1, %v1233_v21, %v1237_v36  ;;  %v1742_v23 = vshll.u32 %v2903_v42, 16  ;;  %v1740_v25 = vshrl.u32 %v2903_v42, 16 }
  0xfc   : > { %v1756_v14 = vrot.slane %v1754_v10, 1  ;;  %v2935_v18 = vcombine.low %v2791_v51, %v4299_v26  ;;  %v1888_v21 = vrot.slane %v2936_v22, 1 }
  0xfd   : > { %1915 = vrot.lane.b32.xlu0 %v1881_v19, %s3308_s30  ;;  %v4280_v48 = vpop.permute.xlu1 %1265  ;;  %v1937_v19 = vsel %vm1923_vm3, %v3633_v20, %v4210_v13  ;;  %v1378_v13 = vsel %vm818_vm0, %v1376_v4, %v1377_v45 }
  0xfe   : > { %v1757_v57 = vor.u32 %v1756_v14, %v1752_v31  ;;  %v1885_v26 = vrot.slane %v2935_v18, 1 }
  0xff   : > { %v1264_v27 = vpop.permute.xlu0 %1263  ;;  %768 = vrot.lane.b32.xlu1 %v737_v54, %s3304_s15  ;;  %v1970_v54 = vsel %vm1956_vm4, %v1937_v19, %v4257_v3  ;;  %v1759_v3 = vshll.u32 %v4308_v39, 16 }
 0x100   : > { %v2003_v60 = vsel %vm1989_vm5, %v1970_v54, %v992_v50 }
 0x101   : > { %1917 = vrot.lane.b32.xlu0 %v1884_v55, %s3308_s30  ;;  %v4291_v43 = vpop.permute.xlu1 %1393  ;;  %v2036_v20 = vsel %vm2022_vm6, %v2003_v60, %v1264_v27  ;;  %v1972_v27 = vsel %vm1956_vm4, %v1939_v5, %v4248_v30 }
 0x102   : > { %v2005_v29 = vsel %vm1989_vm5, %v1972_v27, %v4270_v58  ;;  %v1761_v58 = vrot.slane %v1759_v3, 1 }
 0x103   : > { %v1392_v12 = vpop.permute.xlu0 %1391  ;;  %897 = vrot.lane.b32.xlu1 %v866_v53, %s3303_s12  ;;  %v1744_v53 = vrot.slane %v1742_v23, 1 }
 0x104   : > { %v2069_v50 = vsel %vm2055_vm7, %v2036_v20, %v1392_v12  ;;  %v1762_v2 = vsel %vm545_vm1, %v1757_v57, %v1761_v58 }
 0x105   : > { %895 = vrot.lane.b32.xlu0 %v863_v35, %s3303_s12  ;;  %v1506_v40 = vpop.permute.xlu1 %1505  ;;  %v2038_v35 = vsel %vm2022_vm6, %v2005_v29, %v4280_v48  ;;  %v1745_v0 = vor.u32 %v1744_v53, %v1740_v25 }
 0x106   : > { %v2071_v30 = vsel %vm2055_vm7, %v2038_v35, %v4291_v43 }
 0x107   : > { %v1504_v28 = vpop.permute.xlu0 %1503  ;;  %1009 = vrot.lane.b32.xlu1 %v2856_v56, %s3301_s10  ;;  %v3234_v56 = vld [vmem:[%s3396_s9 + $0xc8] ss:$0 sps:$4 sm:$0x11]   ;;  %v2104_v12 = vsel %vm2088_vm8, %v2071_v30, %v1506_v40  ;;  %v1889_v40 = vrot.slane %v4308_v39, 1  ;;  %s3241_s9 = sshll.u32 %s3312_s22, 4  ;;  %s3242_s9 = int_to_ptr.vmem [resolvable:$false] %s3241_s9 }
 0x108   : > { %v2102_v63 = vsel %vm2088_vm8, %v2069_v50, %v1504_v28  ;;  %v1747_v16 = vshll.u32 %v3234_v56, 16  ;;  %v1886_v4 = vrot.slane %v3234_v56, 1 }
 0x109   : > { %1007 = vrot.lane.b32.xlu0 %v2855_v32, %s3301_s10  ;;  %v1778_v44 = vpop.permute.xlu1 %1777  ;;  %v1375_v32 = vsel %vm818_vm0, %v1373_v33, %v1374_v49  ;;  %s3243_s10 = scalar_lea.vmem %s3242_s9, 32 }
 0x10a   : > { %v1749_v48 = vrot.slane %v1747_v16, 1  ;;  %v2137_v41 = vsel %vm2121_vm9, %v2104_v12, %v1778_v44  ;;  %v1887_v33 = vsel %vm818_vm0, %v1885_v26, %v1886_v4 }
 0x10b   : > { %v1776_v55 = vpop.permute.xlu0 %1775  ;;  %1281 = vrot.lane.b32.xlu1 %v1250_v61, %s3305_s23 }
 0x10c   : > { %v2135_v37 = vsel %vm2121_vm9, %v2102_v63, %v1776_v55  ;;  %v1750_v28 = vsel %vm545_vm1, %v1745_v0, %v1749_v48 }
 0x10d   : > { %1279 = vrot.lane.b32.xlu0 %v1238_v46, %s3305_s23  ;;  %v755_v59 = vpop.permute.xlu1 %754  ;;  %s216_s23 = scalar_lea.vmem [#allocation2], %s215_s14 }
 0x10e   : > { %v1941_v46 = vsel %vm1923_vm3, %v3732_v6, %v755_v59 }
 0x10f   : > { %v1904_v9 = vpop.permute.xlu0 %1903  ;;  %1409 = vrot.lane.b32.xlu1 %v1378_v13, %s3302_s11 }
 0x110   : > { %v2168_v1 = vsel %vm2154_vm10, %v2135_v37, %v1904_v9 }
 0x111   : > { %1407 = vrot.lane.b32.xlu0 %v1375_v32, %s3302_s11  ;;  %3001 = vmatprep.mubr.msk.bf16.mxu0 %vm2214_vm11, %v2168_v1  ;;  %v757_v52 = vpop.permute.xlu1 %756 }
 0x112   : > { %v1943_v20 = vsel %vm1923_vm3, %v3749_v24, %v757_v52 }
 0x113   : > { %v1906_v17 = vpop.permute.xlu0 %1905  ;;  %1521 = vrot.lane.b32.xlu1 %v2904_v34, %s3306_s25  ;;  %v1890_v34 = vsel %vm818_vm0, %v1888_v21, %v1889_v40 }
 0x114   : > { %v2170_v43 = vsel %vm2154_vm10, %v2137_v41, %v1906_v17 }
 0x115   : > { %1519 = vrot.lane.b32.xlu0 %v2903_v42, %s3306_s25  ;;  %3002 = vmatmul.mubr.msk.bf16.gmra.mrb[12].mxu0 %vm2214_vm11, %v2170_v43  ;;  %v886_v36 = vpop.permute.xlu1 %885  ;;  %s2605_s25 = sshll.u32 %s216_s23, 4  ;;  %s4530_s25 = int_to_ptr.vmem [resolvable:$true] %s2605_s25 }
 0x116   : > { %v1976_v32 = vsel %vm1956_vm4, %v1943_v20, %v886_v36  ;;  %s3237_s8 = scalar_lea.vmem %s4530_s25, 16  ;;  %p3244_p0 = scmp.lt.s32.totalorder %s4530_s25, %s3242_s9 }
 0x117   : > { %v884_v45 = vpop.permute.xlu0 %883  ;;  %1793 = vrot.lane.b32.xlu1 %v1762_v2, %s3307_s26  ;;  %p3238_p11 = scmp.ne.s32.totalorder %s4530_s25, %s3237_s8  ;;  %p3245_p1 = scmp.lt.s32.totalorder %s3243_s10, %s3237_s8 }
 0x118   : > { %v1974_v56 = vsel %vm1956_vm4, %v1941_v46, %v884_v45 }
 0x119   : > { %1791 = vrot.lane.b32.xlu0 %v1750_v28, %s3307_s26  ;;  %v998_v42 = vpop.permute.xlu1 %997  ;;  %p3239_p12 = pnand %p3238_p11, %p3381_p5  ;;  %p3246_p2 = por %p3245_p1, %p3244_p0 }
 0x11a   : > { %v2009_v6 = vsel %vm1989_vm5, %v1976_v32, %v998_v42 }
 0x11b   : > { %v996_v49 = vpop.permute.xlu0 %995  ;;  %1921 = vrot.lane.b32.xlu1 %v1890_v34, %s3308_s30  ;;  %p3240_p13 = pneg %p3239_p12 }
 0x11c   : > { %v2007_v60 = vsel %vm1989_vm5, %v1974_v56, %v996_v49 }
 0x11d   : > { %1919 = vrot.lane.b32.xlu0 %v1887_v33, %s3308_s30  ;;  %v1270_v39 = vpop.permute.xlu1 %1269  ;;  %p3247_p3 = pnand %p3246_p2, %p3240_p13 }
 0x11e   : > { %v2042_v25 = vsel %vm2022_vm6, %v2009_v6, %v1270_v39 }
 0x11f   : > { %v1268_v19 = vpop.permute.xlu0 %1267 }
 0x120   : > { %v2040_v31 = vsel %vm2022_vm6, %v2007_v60, %v1268_v19 }
 0x121   : > { %v1398_v61 = vpop.permute.xlu1 %1397 }
 0x122   : > { %v2075_v63 = vsel %vm2055_vm7, %v2042_v25, %v1398_v61 }
 0x123   : > { %v1396_v10 = vpop.permute.xlu0 %1395 }
 0x124   : > { %v2073_v13 = vsel %vm2055_vm7, %v2040_v31, %v1396_v10 }
 0x125   : > { %v1510_v54 = vpop.permute.xlu1 %1509 }
 0x126   : > { %v2108_v24 = vsel %vm2088_vm8, %v2075_v63, %v1510_v54 }
 0x127   : > { %v1508_v44 = vpop.permute.xlu0 %1507 }
 0x128   : > { %v2106_v3 = vsel %vm2088_vm8, %v2073_v13, %v1508_v44 }
 0x129   : > { %v1782_v23 = vpop.permute.xlu1 %1781 }
 0x12a   : > { %v2141_v53 = vsel %vm2121_vm9, %v2108_v24, %v1782_v23 }
 0x12b   : > { %v1780_v55 = vpop.permute.xlu0 %1779 }
 0x12c   : > { %v2139_v50 = vsel %vm2121_vm9, %v2106_v3, %v1780_v55 }
 0x12d   : > { %v759_v5 = vpop.permute.xlu1 %758 }
 0x12e   : > { %v1945_v12 = vsel %vm1923_vm3, %v3875_v7, %v759_v5 }
 0x12f   : > { %v1908_v14 = vpop.permute.xlu0 %1907 }
 0x130   : > { %v2172_v27 = vsel %vm2154_vm10, %v2139_v50, %v1908_v14 }
 0x131   : > { %3005 = vmatprep.mubr.msk.bf16.mxu0 %vm2214_vm11, %v2172_v27  ;;  %v761_v59 = vpop.permute.xlu1 %760 }
 0x132   : > { %v1947_v17 = vsel %vm1923_vm3, %v3899_v38, %v761_v59 }
 0x133   : > { %v1910_v16 = vpop.permute.xlu0 %1909 }
 0x134   : > { %v2174_v15 = vsel %vm2154_vm10, %v2141_v53, %v1910_v16 }
 0x135   : > { %3006 = vmatmul.mubr.msk.bf16.gmra.mrb[16].mxu0 %vm2214_vm11, %v2174_v15  ;;  %v890_v29 = vpop.permute.xlu1 %889 }
 0x136   : > { %v1980_v2 = vsel %vm1956_vm4, %v1947_v17, %v890_v29 }
 0x137   : > { %v888_v37 = vpop.permute.xlu0 %887 }
 0x138   : > { %v1978_v52 = vsel %vm1956_vm4, %v1945_v12, %v888_v37 }
 0x139   : > { %v1002_v9 = vpop.permute.xlu1 %1001 }
 0x13a   : > { %v2013_v7 = vsel %vm1989_vm5, %v1980_v2, %v1002_v9 }
 0x13b   : > { %v1000_v51 = vpop.permute.xlu0 %999 }
 0x13c   : > { %v2011_v48 = vsel %vm1989_vm5, %v1978_v52, %v1000_v51 }
 0x13d   : > { %v1274_v35 = vpop.permute.xlu1 %1273 }
 0x13e   : > { %v2046_v26 = vsel %vm2022_vm6, %v2013_v7, %v1274_v35 }
 0x13f   : > { %v1272_v1 = vpop.permute.xlu0 %1271 }
 0x140   : > { %v2044_v41 = vsel %vm2022_vm6, %v2011_v48, %v1272_v1 }
 0x141   : > { %v1402_v30 = vpop.permute.xlu1 %1401 }
 0x142   : > { %v2079_v45 = vsel %vm2055_vm7, %v2046_v26, %v1402_v30 }
 0x143   : > { %v1400_v57 = vpop.permute.xlu0 %1399 }
 0x144   : > { %v2077_v43 = vsel %vm2055_vm7, %v2044_v41, %v1400_v57 }
 0x145   : > { %v1514_v58 = vpop.permute.xlu1 %1513 }
 0x146   : > { %v2112_v38 = vsel %vm2088_vm8, %v2079_v45, %v1514_v58 }
 0x147   : > { %v1512_v22 = vpop.permute.xlu0 %1511 }
 0x148   : > { %v2110_v21 = vsel %vm2088_vm8, %v2077_v43, %v1512_v22 }
 0x149   : > { %v1786_v0 = vpop.permute.xlu1 %1785 }
 0x14a   : > { %v2145_v42 = vsel %vm2121_vm9, %v2112_v38, %v1786_v0  ;;  %v4427_v0 = vld [vmem:[%s4572_s2] ss:$0 sm:$0xff] }
 0x14b   : > { %v1784_v18 = vpop.permute.xlu0 %1783 }
 0x14c   : > { %v2143_v36 = vsel %vm2121_vm9, %v2110_v21, %v1784_v18 }
 0x14d   : > { %v763_v40 = vpop.permute.xlu1 %762 }
 0x14e   : > { %v1949_v55 = vsel %vm1923_vm3, %v4023_v11, %v763_v40 }
 0x14f   : > { %v1912_v28 = vpop.permute.xlu0 %1911 }
 0x150   : > { %v2176_v4 = vsel %vm2154_vm10, %v2143_v36, %v1912_v28 }
 0x151   : > { %3009 = vmatprep.mubr.msk.bf16.mxu1 %vm2214_vm11, %v2176_v4  ;;  %v765_v34 = vpop.permute.xlu1 %764 }
 0x152   : > { %v1951_v5 = vsel %vm1923_vm3, %v4052_v8, %v765_v34 }
 0x153   : > { %v1914_v33 = vpop.permute.xlu0 %1913 }
 0x154   : > { %v2178_v49 = vsel %vm2154_vm10, %v2145_v42, %v1914_v33 }
 0x155   : > { %3010 = vmatmul.mubr.msk.bf16.vlgmr.msra.gmra.mrb[0].mxu1 %vm2214_vm11, %v2178_v49  ;;  %v894_v39 = vpop.permute.xlu1 %893 }
 0x156   : > { %v1984_v50 = vsel %vm1956_vm4, %v1951_v5, %v894_v39 }
 0x157   : > { %v892_v19 = vpop.permute.xlu0 %891 }
 0x158   : > { %v1982_v31 = vsel %vm1956_vm4, %v1949_v55, %v892_v19 }
 0x159   : > { %v1006_v61 = vpop.permute.xlu1 %1005 }
 0x15a   : > { %v2017_v11 = vsel %vm1989_vm5, %v1984_v50, %v1006_v61 }
 0x15b   : > { %v1004_v10 = vpop.permute.xlu0 %1003 }
 0x15c   : > { %v2015_v13 = vsel %vm1989_vm5, %v1982_v31, %v1004_v10 }
 0x15d   : > { %v1278_v54 = vpop.permute.xlu1 %1277 }
 0x15e   : > { %v2050_v24 = vsel %vm2022_vm6, %v2017_v11, %v1278_v54 }
 0x15f   : > { %v1276_v44 = vpop.permute.xlu0 %1275 }
 0x160   : > { %v2048_v3 = vsel %vm2022_vm6, %v2015_v13, %v1276_v44 }
 0x161   : > { %v1406_v46 = vpop.permute.xlu1 %1405 }
 0x162   : > { %v2083_v53 = vsel %vm2055_vm7, %v2050_v24, %v1406_v46 }
 0x163   : > { %v1404_v56 = vpop.permute.xlu0 %1403 }
 0x164   : > { %v2081_v6 = vsel %vm2055_vm7, %v2048_v3, %v1404_v56 }
 0x165   : > { %v1518_v23 = vpop.permute.xlu1 %1517 }
 0x166   : > { %v2116_v8 = vsel %vm2088_vm8, %v2083_v53, %v1518_v23 }
 0x167   : > { %v1516_v60 = vpop.permute.xlu0 %1515 }
 0x168   : > { %v2114_v14 = vsel %vm2088_vm8, %v2081_v6, %v1516_v60 }
 0x169   : > { %v1790_v20 = vpop.permute.xlu1 %1789 }
 0x16a   : > { %v2149_v15 = vsel %vm2121_vm9, %v2116_v8, %v1790_v20 }
 0x16b   : > { %v1788_v32 = vpop.permute.xlu0 %1787 }
 0x16c   : > { %v2147_v27 = vsel %vm2121_vm9, %v2114_v14, %v1788_v32 }
 0x16d   : > { %v767_v25 = vpop.permute.xlu1 %766 }
 0x16e   : > { %v1953_v48 = vsel %vm1923_vm3, %v4176_v62, %v767_v25 }
 0x16f   : > { %v1916_v63 = vpop.permute.xlu0 %1915 }
 0x170   : > { %v2180_v59 = vsel %vm2154_vm10, %v2147_v27, %v1916_v63 }
 0x171   : > { %3013 = vmatprep.mubr.msk.bf16.mxu1 %vm2214_vm11, %v2180_v59  ;;  %v769_v16 = vpop.permute.xlu1 %768 }
 0x172   : > { %v1955_v18 = vsel %vm1923_vm3, %v4205_v47, %v769_v16 }
 0x173   : > { %v1918_v29 = vpop.permute.xlu0 %1917 }
 0x174   : > { %v2182_v37 = vsel %vm2154_vm10, %v2149_v15, %v1918_v29 }
 0x175   : > { %3014 = vmatmul.mubr.msk.bf16.gmra.mrb[4].mxu1 %vm2214_vm11, %v2182_v37  ;;  %v898_v9 = vpop.permute.xlu1 %897 }
 0x176   : > { %v1988_v17 = vsel %vm1956_vm4, %v1955_v18, %v898_v9 }
 0x177   : > { %v896_v51 = vpop.permute.xlu0 %895 }
 0x178   : > { %v1986_v43 = vsel %vm1956_vm4, %v1953_v48, %v896_v51 }
 0x179   : > { %v1010_v35 = vpop.permute.xlu1 %1009 }
 0x17a   : > { %v2021_v21 = vsel %vm1989_vm5, %v1988_v17, %v1010_v35 }
 0x17b   : > { %v1008_v1 = vpop.permute.xlu0 %1007 }
 0x17c   : > { %v2019_v40 = vsel %vm1989_vm5, %v1986_v43, %v1008_v1 }
 0x17d   : > { %v1282_v30 = vpop.permute.xlu1 %1281 }
 0x17e   : > { %v2054_v62 = vsel %vm2022_vm6, %v2021_v21, %v1282_v30 }
 0x17f   : > { %v1280_v57 = vpop.permute.xlu0 %1279 }
 0x180   : > { %v2052_v47 = vsel %vm2022_vm6, %v2019_v40, %v1280_v57 }
 0x181   : > { %v1410_v58 = vpop.permute.xlu1 %1409 }
 0x182   : > { %v2087_v38 = vsel %vm2055_vm7, %v2054_v62, %v1410_v58 }
 0x183   : > { %v1408_v22 = vpop.permute.xlu0 %1407 }
 0x184   : > { %v2085_v49 = vsel %vm2055_vm7, %v2052_v47, %v1408_v22 }
 0x185   : > { %v1522_v12 = vpop.permute.xlu1 %1521 }
 0x186   : > { %v2120_v39 = vsel %vm2088_vm8, %v2087_v38, %v1522_v12 }
 0x187   : > { %v1520_v52 = vpop.permute.xlu0 %1519 }
 0x188   : > { %v2991_v41 = vpop.f32.mrb[0].mxu0  ;;  %v2118_v19 = vsel %vm2088_vm8, %v2085_v49, %v1520_v52 }
 0x189   : > { %v2285_v2 = vpop.f32.mrb[1].mxu0  ;;  %v2294_v7 = vadd.f32 %v2991_v41, %v4427_v0  ;;  %v1794_v26 = vpop.permute.xlu1 %1793 }
 0x18a   : > { %v2286_v36 = vadd.f32 %v4427_v0, %v2285_v2  ;;  %v2992_v28 = vpop.f32.mrb[2].mxu0  ;;  %v2153_v10 = vsel %vm2121_vm9, %v2120_v39, %v1794_v26 }
 0x18b   : > { %v2288_v4 = vpop.f32.mrb[3].mxu0  ;;  %v1792_v45 = vpop.permute.xlu0 %1791  ;;  %v2297_v42 = vadd.f32 %v2992_v28, %v4427_v0  ;;  %v2414_v61 = vmax.f32 %v2294_v7, 0.0 }
 0x18c   : > { %v2412_v34 = vmax.f32 %v2286_v36, 0.0  ;;  %v2289_v33 = vadd.f32 %v4427_v0, %v2288_v4  ;;  %v2151_v46 = vsel %vm2121_vm9, %v2118_v19, %v1792_v45 }
 0x18d   : > { %v1922_v44 = vpop.permute.xlu1 %1921  ;;  %v2415_v55 = vmax.f32 %v2297_v42, 0.0  ;;  %v2447_v32 = vsel %vm2022_vm6, %v2414_v61, 0.0 }
 0x18e   : > { %v2413_v54 = vmax.f32 %v2289_v33, 0.0  ;;  %v2186_v56 = vsel %vm2154_vm10, %v2153_v10, %v1922_v44  ;;  %v2444_v60 = vsel %vm2022_vm6, %v2412_v34, 0.0 }
 0x18f   : > { %v1920_v23 = vpop.permute.xlu0 %1919  ;;  %v2449_v5 = vsel %vm2022_vm6, %v2415_v55, 0.0 }
 0x190   : > { %v2445_v31 = vsel %vm2022_vm6, %v2413_v54, 0.0  ;;  %v2184_v20 = vsel %vm2154_vm10, %v2151_v46, %v1920_v23 }
 0x191   : > { %v2446_v13 = vadd.f32 %v2445_v31, %v2444_v60  ;;  %3017 = vmatprep.mubr.msk.bf16.mxu1 %vm2214_vm11, %v2184_v20 }
 0x192   : > { %3018 = vmatmul.mubr.msk.bf16.gmra.mrb[8].mxu1 %vm2214_vm11, %v2186_v56 }
 0x193   : > { %v2448_v3 = vadd.f32 %v2447_v32, %v2446_v13 }
 0x195   : > { %v2450_v6 = vadd.f32 %v2449_v5, %v2448_v3  ;;  %v2514_v3 = vld [vmem:[%s4573_s3] sm:$0xff]  ;;  %v2515_v5 = vld [vmem:[%s4573_s3 + $0x8] sm:$0xff] }
 0x1a8   : > { %v2995_v50 = vpop.f32.mrb[4].mxu0 }
 0x1a9   : > { %v2301_v14 = vpop.f32.mrb[5].mxu0  ;;  %v2310_v25 = vadd.f32 %v2995_v50, %v4427_v0  ;;  %v3309_v50 = vmov 0.0|0.0  }
 0x1aa   : > { %v2302_v11 = vadd.f32 %v4427_v0, %v2301_v14  ;;  %v2996_v27 = vpop.f32.mrb[6].mxu0  ;;  %3028 = vmatprep.subr.bf16.mxu1 %v3309_v50  ;;  %v3311_v14 = vmov 0.0  }
 0x1ab   : > { %v2304_v63 = vpop.f32.mrb[7].mxu0  ;;  %v2313_v59 = vadd.f32 %v2996_v27, %v4427_v0  ;;  %v2418_v8 = vmax.f32 %v2310_v25, 0.0  ;;  %3025 = vmatprep.mubr.msk.f32.mxu1 %vm3310_vm12, %v3311_v14 }
 0x1ac   : > { %v2416_v24 = vmax.f32 %v2302_v11, 0.0  ;;  %v2305_v53 = vadd.f32 %v4427_v0, %v2304_v63 }
 0x1ad   : > { %v2419_v37 = vmax.f32 %v2313_v59, 0.0  ;;  %v2455_v35 = vsel %vm2022_vm6, %v2418_v8, 0.0 }
 0x1ae   : > { %v2451_v16 = vsel %vm2022_vm6, %v2416_v24, 0.0  ;;  %v2417_v15 = vmax.f32 %v2305_v53, 0.0 }
 0x1af   : > { %v2452_v29 = vadd.f32 %v2451_v16, %v2450_v6  ;;  %v2457_v30 = vsel %vm2022_vm6, %v2419_v37, 0.0  ;;  %v3029_v6 = vpack.c.bf16 %v2515_v5, %v2514_v3 }
 0x1b0   : > { %v2453_v9 = vsel %vm2022_vm6, %v2417_v15, 0.0 }
 0x1b1   : > { %v2454_v51 = vadd.f32 %v2453_v9, %v2452_v29  ;;  %3030 = vmatpush3.bf16.msra.mxu1 %v3029_v6 }
 0x1b3   : > { %v2456_v1 = vadd.f32 %v2455_v35, %v2454_v51 }
 0x1b5   : > { %v2458_v57 = vadd.f32 %v2457_v30, %v2456_v1 }
 0x1c8   : > { %v2999_v58 = vpop.f32.mrb[8].mxu0 }
 0x1c9   : > { %v2317_v22 = vpop.f32.mrb[9].mxu0  ;;  %v2326_v12 = vadd.f32 %v2999_v58, %v4427_v0 }
 0x1ca   : > { %v2318_v52 = vadd.f32 %v4427_v0, %v2317_v22  ;;  %v3000_v48 = vpop.f32.mrb[10].mxu0 }
 0x1cb   : > { %v2320_v18 = vpop.f32.mrb[11].mxu0  ;;  %v2329_v17 = vadd.f32 %v3000_v48, %v4427_v0  ;;  %v2422_v2 = vmax.f32 %v2326_v12, 0.0 }
 0x1cc   : > { %v2420_v41 = vmax.f32 %v2318_v52, 0.0  ;;  %v2321_v43 = vadd.f32 %v4427_v0, %v2320_v18 }
 0x1cd   : > { %v2423_v36 = vmax.f32 %v2329_v17, 0.0  ;;  %v2463_v62 = vsel %vm2022_vm6, %v2422_v2, 0.0 }
 0x1ce   : > { %v2459_v21 = vsel %vm2022_vm6, %v2420_v41, 0.0  ;;  %v2421_v40 = vmax.f32 %v2321_v43, 0.0 }
 0x1cf   : > { %v2460_v7 = vadd.f32 %v2459_v21, %v2458_v57  ;;  %v2465_v4 = vsel %vm2022_vm6, %v2423_v36, 0.0 }
 0x1d0   : > { %v2461_v28 = vsel %vm2022_vm6, %v2421_v40, 0.0 }
 0x1d1   : > { %v2462_v26 = vadd.f32 %v2461_v28, %v2460_v7 }
 0x1d3   : > { %v2464_v47 = vadd.f32 %v2463_v62, %v2462_v26 }
 0x1d5   : > { %v2466_v45 = vadd.f32 %v2465_v4, %v2464_v47 }
 0x1e8   : > { %v3003_v38 = vpop.f32.mrb[12].mxu0 }
 0x1e9   : > { %v2333_v34 = vpop.f32.mrb[13].mxu0  ;;  %v2342_v42 = vadd.f32 %v3003_v38, %v4427_v0 }
 0x1ea   : > { %v2334_v33 = vadd.f32 %v4427_v0, %v2333_v34  ;;  %v3004_v49 = vpop.f32.mrb[14].mxu0 }
 0x1eb   : > { %v2336_v39 = vpop.f32.mrb[15].mxu0  ;;  %v2345_v61 = vadd.f32 %v3004_v49, %v4427_v0  ;;  %v2426_v54 = vmax.f32 %v2342_v42, 0.0 }
 0x1ec   : > { %v2424_v19 = vmax.f32 %v2334_v33, 0.0  ;;  %v2337_v10 = vadd.f32 %v4427_v0, %v2336_v39 }
 0x1ed   : > { %v2427_v23 = vmax.f32 %v2345_v61, 0.0  ;;  %v2471_v31 = vsel %vm2022_vm6, %v2426_v54, 0.0 }
 0x1ee   : > { %v2467_v44 = vsel %vm2022_vm6, %v2424_v19, 0.0  ;;  %v2425_v46 = vmax.f32 %v2337_v10, 0.0 }
 0x1ef   : > { %v2468_v56 = vadd.f32 %v2467_v44, %v2466_v45  ;;  %v2473_v13 = vsel %vm2022_vm6, %v2427_v23, 0.0 }
 0x1f0   : > { %v2469_v60 = vsel %vm2022_vm6, %v2425_v46, 0.0 }
 0x1f1   : > { %v2470_v55 = vadd.f32 %v2469_v60, %v2468_v56 }
 0x1f3   : > { %v2472_v20 = vadd.f32 %v2471_v31, %v2470_v55 }
 0x1f5   : > { %v2474_v32 = vadd.f32 %v2473_v13, %v2472_v20 }
 0x208   : > { %v3007_v25 = vpop.f32.mrb[16].mxu0 }
 0x209   : > { %v2349_v11 = vpop.f32.mrb[17].mxu0  ;;  %v2358_v27 = vadd.f32 %v3007_v25, %v4427_v0 }
 0x20a   : > { %v2350_v63 = vadd.f32 %v4427_v0, %v2349_v11  ;;  %v3008_v24 = vpop.f32.mrb[18].mxu0 }
 0x20b   : > { %v2352_v59 = vpop.f32.mrb[19].mxu0  ;;  %v2361_v8 = vadd.f32 %v3008_v24, %v4427_v0  ;;  %v2430_v15 = vmax.f32 %v2358_v27, 0.0 }
 0x20c   : > { %v2428_v53 = vmax.f32 %v2350_v63, 0.0  ;;  %v2353_v16 = vadd.f32 %v4427_v0, %v2352_v59 }
 0x20d   : > { %v2431_v51 = vmax.f32 %v2361_v8, 0.0  ;;  %v2479_v30 = vsel %vm2022_vm6, %v2430_v15, 0.0 }
 0x20e   : > { %v2475_v29 = vsel %vm2022_vm6, %v2428_v53, 0.0  ;;  %v2429_v37 = vmax.f32 %v2353_v16, 0.0 }
 0x20f   : > { %v2476_v9 = vadd.f32 %v2475_v29, %v2474_v32  ;;  %v2481_v58 = vsel %vm2022_vm6, %v2431_v51, 0.0 }
 0x210   : > { %v2477_v35 = vsel %vm2022_vm6, %v2429_v37, 0.0 }
 0x211   : > { %v2478_v1 = vadd.f32 %v2477_v35, %v2476_v9 }
 0x213   : > { %v2480_v57 = vadd.f32 %v2479_v30, %v2478_v1 }
 0x215   : > { %v2482_v22 = vadd.f32 %v2481_v58, %v2480_v57 }
 0x228   : > { %v3011_v12 = vpop.f32.mrb[0].mxu1 }
 0x229   : > { %v2365_v52 = vpop.f32.mrb[1].mxu1  ;;  %v2374_v48 = vadd.f32 %v3011_v12, %v4427_v0 }
 0x22a   : > { %v2366_v18 = vadd.f32 %v4427_v0, %v2365_v52  ;;  %v3012_v41 = vpop.f32.mrb[2].mxu1 }
 0x22b   : > { %v2368_v17 = vpop.f32.mrb[3].mxu1  ;;  %v2377_v2 = vadd.f32 %v3012_v41, %v4427_v0  ;;  %v2434_v40 = vmax.f32 %v2374_v48, 0.0 }
 0x22c   : > { %v2432_v43 = vmax.f32 %v2366_v18, 0.0  ;;  %v2369_v21 = vadd.f32 %v4427_v0, %v2368_v17  ;;  %v2516_v18 = vld [vmem:[%s4574_s4] sm:$0x1] }
 0x22d   : > { %v2435_v26 = vmax.f32 %v2377_v2, 0.0  ;;  %v2487_v4 = vsel %vm2022_vm6, %v2434_v40, 0.0 }
 0x22e   : > { %v2483_v7 = vsel %vm2022_vm6, %v2432_v43, 0.0  ;;  %v2433_v36 = vmax.f32 %v2369_v21, 0.0 }
 0x22f   : > { %v2484_v28 = vadd.f32 %v2483_v7, %v2482_v22  ;;  %v2489_v38 = vsel %vm2022_vm6, %v2435_v26, 0.0 }
 0x230   : > { %v2485_v62 = vsel %vm2022_vm6, %v2433_v36, 0.0 }
 0x231   : > { %v2486_v47 = vadd.f32 %v2485_v62, %v2484_v28 }
 0x233   : > { %v2488_v45 = vadd.f32 %v2487_v4, %v2486_v47 }
 0x235   : > { %v2490_v34 = vadd.f32 %v2489_v38, %v2488_v45 }
 0x248   : > { %v3015_v42 = vpop.f32.mrb[4].mxu1 }
 0x249   : > { %v2381_v33 = vpop.f32.mrb[5].mxu1  ;;  %v2390_v49 = vadd.f32 %v3015_v42, %v4427_v0 }
 0x24a   : > { %v2382_v39 = vadd.f32 %v4427_v0, %v2381_v33  ;;  %v3016_v19 = vpop.f32.mrb[6].mxu1 }
 0x24b   : > { %v2384_v61 = vpop.f32.mrb[7].mxu1  ;;  %v2393_v54 = vadd.f32 %v3016_v19, %v4427_v0  ;;  %v2438_v46 = vmax.f32 %v2390_v49, 0.0 }
 0x24c   : > { %v2436_v10 = vmax.f32 %v2382_v39, 0.0  ;;  %v2385_v44 = vadd.f32 %v4427_v0, %v2384_v61 }
 0x24d   : > { %v2439_v55 = vmax.f32 %v2393_v54, 0.0  ;;  %v2495_v13 = vsel %vm2022_vm6, %v2438_v46, 0.0 }
 0x24e   : > { %v2491_v56 = vsel %vm2022_vm6, %v2436_v10, 0.0  ;;  %v2437_v23 = vmax.f32 %v2385_v44, 0.0 }
 0x24f   : > { %v2492_v60 = vadd.f32 %v2491_v56, %v2490_v34  ;;  %v2497_v3 = vsel %vm2022_vm6, %v2439_v55, 0.0 }
 0x250   : > { %v2493_v31 = vsel %vm2022_vm6, %v2437_v23, 0.0 }
 0x251   : > { %v2494_v20 = vadd.f32 %v2493_v31, %v2492_v60 }
 0x253   : > { %v2496_v32 = vadd.f32 %v2495_v13, %v2494_v20 }
 0x255   : > { %v2498_v5 = vadd.f32 %v2497_v3, %v2496_v32 }
 0x265   : > { %v3019_v6 = vpop.f32.mrb[8].mxu1 }
 0x266   : > { %v2397_v50 = vpop.f32.mrb[9].mxu1  ;;  %v2406_v14 = vadd.f32 %v3019_v6, %v4427_v0 }
 0x267   : > { %v2398_v25 = vadd.f32 %v4427_v0, %v2397_v50  ;;  %v3020_v11 = vpop.f32.mrb[10].mxu1 }
 0x268   : > { %v2400_v27 = vpop.f32.mrb[11].mxu1  ;;  %v2409_v24 = vadd.f32 %v3020_v11, %v4427_v0  ;;  %v2442_v53 = vmax.f32 %v2406_v14, 0.0 }
 0x269   : > { %v2440_v63 = vmax.f32 %v2398_v25, 0.0  ;;  %v2401_v59 = vadd.f32 %v4427_v0, %v2400_v27 }
 0x26a   : > { %v2443_v29 = vmax.f32 %v2409_v24, 0.0  ;;  %v2503_v51 = vsel %vm2022_vm6, %v2442_v53, 0.0 }
 0x26b   : > { %v2499_v8 = vsel %vm2022_vm6, %v2440_v63, 0.0  ;;  %v2441_v16 = vmax.f32 %v2401_v59, 0.0 }
 0x26c   : > { %v2500_v15 = vadd.f32 %v2499_v8, %v2498_v5  ;;  %v2505_v1 = vsel %vm2022_vm6, %v2443_v29, 0.0 }
 0x26d   : > { %v2501_v37 = vsel %vm2022_vm6, %v2441_v16, 0.0 }
 0x26e   : > { %v2502_v9 = vadd.f32 %v2501_v37, %v2500_v15 }
 0x270   : > { %v2504_v35 = vadd.f32 %v2503_v51, %v2502_v9 }
 0x272   : > { %v2506_v30 = vadd.f32 %v2505_v1, %v2504_v35 }
 0x274   : > { %v2507_v57 = vrot.slane %v2506_v30, 4 }
 0x276   : > { %v2508_v58 = vadd.f32 %v2507_v57, %v2506_v30 }
 0x278   : > { %v2509_v0 = vrot.slane %v2508_v58, 2 }
 0x27a   : > { %v2510_v22 = vadd.f32 %v2509_v0, %v2508_v58 }
 0x27c   : > { %v2511_v12 = vrot.slane %v2510_v22, 1 }
 0x27e   : > { %v2512_v52 = vadd.f32 %v2511_v12, %v2510_v22 }
 0x280   : > { %v2513_v48 = vmul.f32 0.00390625, %v2512_v52 }
 0x282   : > { %3026 = vmatmul.mubr.msk.f32.vlgmr.msra.gmra.mrb[12].mxu1 %vm2022_vm6, %v2513_v48 }
 0x355   : > { %v2586_v41 = vpop.f32.mrb[12].mxu1 }
 0x356   : > { %v2587_v17 = vadd.f32 %v2586_v41, %v2516_v18  ;;  %v3027_v43 = vpop.f32.mrb[13].mxu1 }
 0x358   : > { %2591 = vst.msk [vmem:[%s216_s23] sm:$0x1] %vm2590_vm13, %v2587_v17 }
 0x359   : > { %3250 = shalt.err (!%p3247_p3)
}
 0x35a   : > { %s3251_s11 = scalar_lea.hbm %s4528_s6, 16  ;;  %s3255_s14 = scalar_lea.hbm %s4575_s5, 32 }
 0x35b   : > { %p3252_p4 = scmp.ne.s32.totalorder %s4528_s6, %s3251_s11  ;;  %p3256_p9 = scmp.lt.u32.totalorder %s4528_s6, %s4575_s5 }
 0x35c   : > { %p3257_p10 = scmp.lt.u32.totalorder %s3255_s14, %s3251_s11  ;;  %p3259_p12 = scmp.lt.u32.totalorder %s3251_s11, %s4528_s6 }
 0x35d   : > { %p3253_p7 = pnand %p3252_p4, %p3381_p5 }
 0x35e   : > { %p3258_p11 = por %p3257_p10, %p3256_p9 }
 0x35f   : > { %p3254_p8 = pneg %p3253_p7 }
 0x360   : > { %p3260_p13 = por %p3259_p12, %p3258_p11 }
 0x362   : > { %p3261_p0 = pnand %p3260_p13, %p3254_p8 }
 0x364   : > { %3264 = shalt.err (!%p3261_p0)
}
 0x365   : > { %3040 = dma.vmem_to_hbm [thread:$0]  (%p3381_p5), %s4530_s25, 16, %s4528_s6, %s2593_s7  }
 0x366 PF: > { %p3046_p1 = scmp.ge.s32.totalorder %s3299_s21, 2  ;;  %s2617_s17 = sand.u32 1, %s3287_s18  }
 0x367   : > { %s2618_s23 = scalar_lea.sflag [#allocation3], %s2617_s17 }
 0x368   : > { %p3043_p2 = pnand %p3046_p1, %p3385_p6 }
 0x36a   : > { %3282 = dma.done.wait (!%p3043_p2), %s2618_s23, 16  }
 0x36b   : > { %3284 = vsyncadd (!%p3043_p2), %s2618_s23, 4294967280  ;;  %p15_p3 = scmp.ge.s32.totalorder %s3368_s24, 4   ;;  %s4578_s18 = smov %s3291_s19 }
 0x36c   : > { %s4579_s19 = smov %s3295_s20  ;;  %s4580_s20 = smov %s3379_s27 }
 0x36d   : > { %s4581_s21 = smov %s3368_s24  ;;  %17 = sbr.rel (!%p15_p3) target bundleno = 3 (0x3), region = 77 }
 0x374   :  { %2622 = vsyncpa [#allocation3], 1 }
 0x375   :  { %2624 = vsyncpa [#allocation3 + $0x1], 1 }

</bundles_post_ra>
